<compile_context>
chip_gen: v7x
topology: tpu7x:2x2x1
jax: 0.10.0
libtpu: 0.0.40
codegen_flags: <defaults>
</compile_context>

<pallas_src>
import functools

import jax
import jax.numpy as jnp
from jax import lax
from jax.experimental import pallas as pl
from jax.experimental.pallas import tpu as pltpu


def _log_sigmoid(x):
    # numerically stable log(sigmoid(x)) = min(x, 0) - log1p(exp(-|x|))
    return jnp.minimum(x, 0.0) - jnp.log1p(jnp.exp(-jnp.abs(x)))


def _skipgram_kernel(in_lbl_ref,    # (1, TB)       int32  VMEM block
                     ctx_lbl_ref,   # (1, CTX, TB)  int32  VMEM block
                     in_tab_ref,    # (Vp, E)       f32    whole-resident VMEM
                     out_tab_ref,   # (Vp, E)       f32    whole-resident VMEM
                     out_ref,       # (1, TB)       f32    lane-dense loss
                     *, n_pos):
    v_pad = in_tab_ref.shape[0]
    n_ctx = ctx_lbl_ref.shape[1]
    tb = ctx_lbl_ref.shape[2]

    in_tab = in_tab_ref[...]
    out_tab = out_tab_ref[...]

    # gram[v, u] = out_embed[v] . in_embed[u]   -- (Vp,E) x (Vp,E)^T on the MXU
    gram = lax.dot_general(
        out_tab, in_tab,
        dimension_numbers=(((1,), (1,)), ((), ())),
        preferred_element_type=jnp.float32)                     # (Vp, Vp)

    # Lane-dense one-hot of center labels: vocab on sublanes, batch on lanes.
    iota_v = lax.broadcasted_iota(jnp.int32, (v_pad, tb), 0)
    oh_in = (iota_v == in_lbl_ref[...]).astype(jnp.float32)     # (Vp, TB)

    # scores[v, b] = out_embed[v] . in_embed[in_lbl[b]]  (one MXU matmul;
    # the one-hot column picks a single gram column exactly — no extra error).
    scores = jnp.dot(gram, oh_in,
                     preferred_element_type=jnp.float32)        # (Vp, TB)

    ctx = ctx_lbl_ref[0]                                        # (CTX, TB)
    total = jnp.zeros((1, tb), jnp.float32)
    for j in range(n_ctx):                      # static, small, unrolled
        oh_j = iota_v == ctx[j:j + 1, :]                        # (Vp, TB)
        dot_j = jnp.sum(jnp.where(oh_j, scores, 0.0),
                        axis=0, keepdims=True)                  # (1, TB)
        x = dot_j if j < n_pos else -dot_j      # static pos/neg split
        total = total + _log_sigmoid(x)

    out_ref[...] = -total                       # unmasked lane-dense store


def embedding_model_forward(in_embed_w, out_embed_w,
                            input_labels, pos_labels, neg_labels, *, tb=256):
    V, E = in_embed_w.shape
    B = input_labels.shape[0]
    C = pos_labels.shape[1]
    NK = neg_labels.shape[1]
    n_ctx = C + NK

    # Tile size: multiple of 128 (lane-dense), clamped so tiny batches don't
    # pay for a full tile; 256 keeps the v6e/v7x MXU well fed once vectorized.
    tb = max(128, min(tb, pl.cdiv(B, 128) * 128))
    num_tiles = pl.cdiv(B, tb)
    b_pad = num_tiles * tb - B

    # Pad vocab to a lane multiple so the gram/scores matmuls and one-hot
    # masks are fully aligned; padded rows are zero and never selected.
    # TODO(synk): for large vocab (gram / whole tables no longer VMEM-sized)
    # switch to HBM-resident tables + per-tile row-gather DMA double-buffering.
    v_pad = pl.cdiv(V, 128) * 128
    in_tab = jnp.pad(in_embed_w.astype(jnp.float32), ((0, v_pad - V), (0, 0)))
    out_tab = jnp.pad(out_embed_w.astype(jnp.float32), ((0, v_pad - V), (0, 0)))

    # Labels as VMEM-tiled int32 blocks with the batch on the lane axis.
    # Padded rows use label 0 (a valid row) and are sliced off after the call.
    in_lbl = jnp.pad(input_labels.astype(jnp.int32),
                     (0, b_pad)).reshape(num_tiles, tb)
    ctx = jnp.concatenate([pos_labels, neg_labels], axis=1).astype(jnp.int32)
    ctx = jnp.pad(ctx, ((0, b_pad), (0, 0)))
    ctx_lbl = ctx.reshape(num_tiles, tb, n_ctx).transpose(0, 2, 1)

    kernel = functools.partial(_skipgram_kernel, n_pos=C)

    out = pl.pallas_call(
        kernel,
        out_shape=jax.ShapeDtypeStruct((1, num_tiles * tb), jnp.float32),
        grid_spec=pltpu.PrefetchScalarGridSpec(
            num_scalar_prefetch=0,
            grid=(num_tiles,),
            in_specs=[
                pl.BlockSpec((1, tb), lambda i: (i, 0)),
                pl.BlockSpec((1, n_ctx, tb), lambda i: (i, 0, 0)),
                # tiny tables (128x32 f32 = 16 KiB each): whole-resident VMEM
                pl.BlockSpec(memory_space=pltpu.MemorySpace.VMEM),
                pl.BlockSpec(memory_space=pltpu.MemorySpace.VMEM),
            ],
            out_specs=pl.BlockSpec((1, tb), lambda i: (0, i)),
        ),
        compiler_params=pltpu.CompilerParams(
            dimension_semantics=("parallel",)),   # megacore-shardable batch axis
    )(in_lbl, ctx_lbl, in_tab, out_tab)

    return out[0, :B]


def _reference_forward(in_embed_w, out_embed_w,
                       input_labels, pos_labels, neg_labels):
    in_e = jnp.take(in_embed_w, input_labels, axis=0)
    pos_e = jnp.take(out_embed_w, pos_labels, axis=0)
    neg_e = jnp.take(out_embed_w, neg_labels, axis=0)
    pos_dot = jnp.einsum("bce,be->bc", pos_e, in_e)
    neg_dot = jnp.einsum("bce,be->bc", neg_e, -in_e)
    log_pos = jax.nn.log_sigmoid(pos_dot).sum(axis=1)
    log_neg = jax.nn.log_sigmoid(neg_dot).sum(axis=1)
    return -(log_pos + log_neg)


if __name__ == "__main__":
    vocab_size, embed_size = 50, 32
    C, K = 4, 2              # context window size, negatives per positive
    NK = C * K               # total negative samples per example

    key = jax.random.PRNGKey(0)
    k1, k2 = jax.random.split(key)

    # deterministic parameter init matching nn.Embedding.weight.uniform_(-r, r)
    initrange = 0.5 / embed_size
    in_embed_w = jax.random.uniform(
        k1, (vocab_size, embed_size), jnp.float32, -initrange, initrange)
    out_embed_w = jax.random.uniform(
        k2, (vocab_size, embed_size), jnp.float32, -initrange, initrange)

    # B=2: module-scale demo; B=260: exercises multi-tile grid + tail padding.
    for B in (2, 260):
        kb = jax.random.fold_in(key, B)
        k3, k4, k5 = jax.random.split(kb, 3)
        input_labels = jax.random.randint(k3, (B,), 0, vocab_size, jnp.int32)
        pos_labels = jax.random.randint(k4, (B, C), 0, vocab_size, jnp.int32)
        neg_labels = jax.random.randint(k5, (B, NK), 0, vocab_size, jnp.int32)

        loss = embedding_model_forward(
            in_embed_w, out_embed_w, input_labels, pos_labels, neg_labels)
        jax.block_until_ready(loss)

        ref = _reference_forward(
            in_embed_w, out_embed_w, input_labels, pos_labels, neg_labels)
        assert loss.shape == (B,)
        assert jnp.allclose(loss, ref, atol=1e-5, rtol=1e-5), (
            float(jnp.max(jnp.abs(loss - ref))))

    print("KERNEL_OK")
</pallas_src>

<mosaic_0001>
module attributes {stable_mosaic.version = 11 : i64} {
  func.func @_skipgram_kernel(%arg0: i32, %arg1: memref<1x128xi32, #tpu.memory_space<vmem>>, %arg2: memref<1x12x128xi32, #tpu.memory_space<vmem>>, %arg3: memref<128x32xf32, #tpu.memory_space<vmem>>, %arg4: memref<128x32xf32, #tpu.memory_space<vmem>>, %arg5: memref<1x128xf32, #tpu.memory_space<vmem>>) attributes {dimension_semantics = [#tpu.dimension_semantics<parallel>], iteration_bounds = array<i64: 1>, scalar_prefetch = 0 : i64, scratch_operands = 0 : i64, tpu.core_type = #tpu.core_type<tc>, window_params = [{transform_indices = @transform_0, window_bounds = array<i64: 1, 128>}, {transform_indices = @transform_1, window_bounds = array<i64: 1, 12, 128>}, {pipeline_mode = #tpu.pipeline_mode<synchronous>, transform_indices = @transform_2, window_bounds = array<i64: 128, 32>}, {pipeline_mode = #tpu.pipeline_mode<synchronous>, transform_indices = @transform_3, window_bounds = array<i64: 128, 32>}, {transform_indices = @transform_4, window_bounds = array<i64: 1, 128>}]} {
    %c0 = arith.constant 0 : index
    %c0_0 = arith.constant 0 : index
    %0 = vector.load %arg3[%c0, %c0_0] : memref<128x32xf32, #tpu.memory_space<vmem>>, vector<128x32xf32>
    %c0_1 = arith.constant 0 : index
    %c0_2 = arith.constant 0 : index
    %1 = vector.load %arg4[%c0_1, %c0_2] : memref<128x32xf32, #tpu.memory_space<vmem>>, vector<128x32xf32>
    %cst = arith.constant dense<0.000000e+00> : vector<128x128xf32>
    %2 = tpu.matmul %1, %0, %cst {dimension_numbers = #tpu.dot_dimension_numbers<[1], [1], [0], [0], [0, 0, 1, 0], [], []>} : vector<128x32xf32>, vector<128x32xf32>, vector<128x128xf32> -> vector<128x128xf32>
    %3 = tpu.iota {dimensions = array<i32: 0>} : vector<128x128xi32>
    %c0_3 = arith.constant 0 : index
    %c0_4 = arith.constant 0 : index
    %4 = vector.load %arg1[%c0_3, %c0_4] : memref<1x128xi32, #tpu.memory_space<vmem>>, vector<1x128xi32>
    %5 = vector.broadcast %4 : vector<1x128xi32> to vector<128x128xi32>
    %6 = arith.cmpi eq, %3, %5 : vector<128x128xi32>
    %7 = arith.extui %6 : vector<128x128xi1> to vector<128x128xi32>
    %8 = arith.sitofp %7 : vector<128x128xi32> to vector<128x128xf32>
    %cst_5 = arith.constant dense<0.000000e+00> : vector<128x128xf32>
    %9 = tpu.matmul %2, %8, %cst_5 {dimension_numbers = #tpu.dot_dimension_numbers<[1], [0], [0], [1], [0, 0, 1, 1], [], []>} : vector<128x128xf32>, vector<128x128xf32>, vector<128x128xf32> -> vector<128x128xf32>
    %c0_6 = arith.constant 0 : index
    %c0_7 = arith.constant 0 : index
    %c0_8 = arith.constant 0 : index
    %10 = vector.load %arg2[%c0_6, %c0_7, %c0_8] : memref<1x12x128xi32, #tpu.memory_space<vmem>>, vector<1x12x128xi32>
    %11 = vector.shape_cast %10 : vector<1x12x128xi32> to vector<12x128xi32>
    %cst_9 = arith.constant 0.000000e+00 : f32
    %12 = vector.broadcast %cst_9 : f32 to vector<1x128xf32>
    %13 = vector.extract_strided_slice %11 {offsets = [0, 0], sizes = [1, 128], strides = [1, 1]} : vector<12x128xi32> to vector<1x128xi32>
    %14 = vector.broadcast %13 : vector<1x128xi32> to vector<128x128xi32>
    %15 = arith.cmpi eq, %3, %14 : vector<128x128xi32>
    %cst_10 = arith.constant 0.000000e+00 : f32
    %16 = vector.broadcast %cst_10 : f32 to vector<128x128xf32>
    %17 = arith.select %15, %9, %16 : vector<128x128xi1>, vector<128x128xf32>
    %cst_11 = arith.constant dense<0.000000e+00> : vector<128xf32>
    %18 = vector.multi_reduction <add>, %17, %cst_11 [0] : vector<128x128xf32> to vector<128xf32>
    %19 = vector.shape_cast %18 : vector<128xf32> to vector<1x128xf32>
    %cst_12 = arith.constant 0.000000e+00 : f32
    %20 = vector.broadcast %cst_12 : f32 to vector<1x128xf32>
    %21 = arith.minimumf %19, %20 : vector<1x128xf32>
    %22 = math.absf %19 : vector<1x128xf32>
    %cst_13 = arith.constant 0.000000e+00 : f32
    %23 = vector.broadcast %cst_13 : f32 to vector<1x128xf32>
    %24 = arith.subf %23, %22 : vector<1x128xf32>
    %25 = math.exp %24 : vector<1x128xf32>
    %26 = math.log1p %25 : vector<1x128xf32>
    %27 = arith.subf %21, %26 : vector<1x128xf32>
    %28 = arith.addf %12, %27 : vector<1x128xf32>
    %29 = vector.extract_strided_slice %11 {offsets = [1, 0], sizes = [1, 128], strides = [1, 1]} : vector<12x128xi32> to vector<1x128xi32>
    %30 = vector.broadcast %29 : vector<1x128xi32> to vector<128x128xi32>
    %31 = arith.cmpi eq, %3, %30 : vector<128x128xi32>
    %cst_14 = arith.constant 0.000000e+00 : f32
    %32 = vector.broadcast %cst_14 : f32 to vector<128x128xf32>
    %33 = arith.select %31, %9, %32 : vector<128x128xi1>, vector<128x128xf32>
    %cst_15 = arith.constant dense<0.000000e+00> : vector<128xf32>
    %34 = vector.multi_reduction <add>, %33, %cst_15 [0] : vector<128x128xf32> to vector<128xf32>
    %35 = vector.shape_cast %34 : vector<128xf32> to vector<1x128xf32>
    %cst_16 = arith.constant 0.000000e+00 : f32
    %36 = vector.broadcast %cst_16 : f32 to vector<1x128xf32>
    %37 = arith.minimumf %35, %36 : vector<1x128xf32>
    %38 = math.absf %35 : vector<1x128xf32>
    %cst_17 = arith.constant 0.000000e+00 : f32
    %39 = vector.broadcast %cst_17 : f32 to vector<1x128xf32>
    %40 = arith.subf %39, %38 : vector<1x128xf32>
    %41 = math.exp %40 : vector<1x128xf32>
    %42 = math.log1p %41 : vector<1x128xf32>
    %43 = arith.subf %37, %42 : vector<1x128xf32>
    %44 = arith.addf %28, %43 : vector<1x128xf32>
    %45 = vector.extract_strided_slice %11 {offsets = [2, 0], sizes = [1, 128], strides = [1, 1]} : vector<12x128xi32> to vector<1x128xi32>
    %46 = vector.broadcast %45 : vector<1x128xi32> to vector<128x128xi32>
    %47 = arith.cmpi eq, %3, %46 : vector<128x128xi32>
    %cst_18 = arith.constant 0.000000e+00 : f32
    %48 = vector.broadcast %cst_18 : f32 to vector<128x128xf32>
    %49 = arith.select %47, %9, %48 : vector<128x128xi1>, vector<128x128xf32>
    %cst_19 = arith.constant dense<0.000000e+00> : vector<128xf32>
    %50 = vector.multi_reduction <add>, %49, %cst_19 [0] : vector<128x128xf32> to vector<128xf32>
    %51 = vector.shape_cast %50 : vector<128xf32> to vector<1x128xf32>
    %cst_20 = arith.constant 0.000000e+00 : f32
    %52 = vector.broadcast %cst_20 : f32 to vector<1x128xf32>
    %53 = arith.minimumf %51, %52 : vector<1x128xf32>
    %54 = math.absf %51 : vector<1x128xf32>
    %cst_21 = arith.constant 0.000000e+00 : f32
    %55 = vector.broadcast %cst_21 : f32 to vector<1x128xf32>
    %56 = arith.subf %55, %54 : vector<1x128xf32>
    %57 = math.exp %56 : vector<1x128xf32>
    %58 = math.log1p %57 : vector<1x128xf32>
    %59 = arith.subf %53, %58 : vector<1x128xf32>
    %60 = arith.addf %44, %59 : vector<1x128xf32>
    %61 = vector.extract_strided_slice %11 {offsets = [3, 0], sizes = [1, 128], strides = [1, 1]} : vector<12x128xi32> to vector<1x128xi32>
    %62 = vector.broadcast %61 : vector<1x128xi32> to vector<128x128xi32>
    %63 = arith.cmpi eq, %3, %62 : vector<128x128xi32>
    %cst_22 = arith.constant 0.000000e+00 : f32
    %64 = vector.broadcast %cst_22 : f32 to vector<128x128xf32>
    %65 = arith.select %63, %9, %64 : vector<128x128xi1>, vector<128x128xf32>
    %cst_23 = arith.constant dense<0.000000e+00> : vector<128xf32>
    %66 = vector.multi_reduction <add>, %65, %cst_23 [0] : vector<128x128xf32> to vector<128xf32>
    %67 = vector.shape_cast %66 : vector<128xf32> to vector<1x128xf32>
    %cst_24 = arith.constant 0.000000e+00 : f32
    %68 = vector.broadcast %cst_24 : f32 to vector<1x128xf32>
    %69 = arith.minimumf %67, %68 : vector<1x128xf32>
    %70 = math.absf %67 : vector<1x128xf32>
    %cst_25 = arith.constant 0.000000e+00 : f32
    %71 = vector.broadcast %cst_25 : f32 to vector<1x128xf32>
    %72 = arith.subf %71, %70 : vector<1x128xf32>
    %73 = math.exp %72 : vector<1x128xf32>
    %74 = math.log1p %73 : vector<1x128xf32>
    %75 = arith.subf %69, %74 : vector<1x128xf32>
    %76 = arith.addf %60, %75 : vector<1x128xf32>
    %77 = vector.extract_strided_slice %11 {offsets = [4, 0], sizes = [1, 128], strides = [1, 1]} : vector<12x128xi32> to vector<1x128xi32>
    %78 = vector.broadcast %77 : vector<1x128xi32> to vector<128x128xi32>
    %79 = arith.cmpi eq, %3, %78 : vector<128x128xi32>
    %cst_26 = arith.constant 0.000000e+00 : f32
    %80 = vector.broadcast %cst_26 : f32 to vector<128x128xf32>
    %81 = arith.select %79, %9, %80 : vector<128x128xi1>, vector<128x128xf32>
    %cst_27 = arith.constant dense<0.000000e+00> : vector<128xf32>
    %82 = vector.multi_reduction <add>, %81, %cst_27 [0] : vector<128x128xf32> to vector<128xf32>
    %83 = vector.shape_cast %82 : vector<128xf32> to vector<1x128xf32>
    %cst_28 = arith.constant 0.000000e+00 : f32
    %84 = vector.broadcast %cst_28 : f32 to vector<1x128xf32>
    %85 = arith.subf %84, %83 : vector<1x128xf32>
    %cst_29 = arith.constant 0.000000e+00 : f32
    %86 = vector.broadcast %cst_29 : f32 to vector<1x128xf32>
    %87 = arith.minimumf %85, %86 : vector<1x128xf32>
    %88 = math.absf %85 : vector<1x128xf32>
    %cst_30 = arith.constant 0.000000e+00 : f32
    %89 = vector.broadcast %cst_30 : f32 to vector<1x128xf32>
    %90 = arith.subf %89, %88 : vector<1x128xf32>
    %91 = math.exp %90 : vector<1x128xf32>
    %92 = math.log1p %91 : vector<1x128xf32>
    %93 = arith.subf %87, %92 : vector<1x128xf32>
    %94 = arith.addf %76, %93 : vector<1x128xf32>
    %95 = vector.extract_strided_slice %11 {offsets = [5, 0], sizes = [1, 128], strides = [1, 1]} : vector<12x128xi32> to vector<1x128xi32>
    %96 = vector.broadcast %95 : vector<1x128xi32> to vector<128x128xi32>
    %97 = arith.cmpi eq, %3, %96 : vector<128x128xi32>
    %cst_31 = arith.constant 0.000000e+00 : f32
    %98 = vector.broadcast %cst_31 : f32 to vector<128x128xf32>
    %99 = arith.select %97, %9, %98 : vector<128x128xi1>, vector<128x128xf32>
    %cst_32 = arith.constant dense<0.000000e+00> : vector<128xf32>
    %100 = vector.multi_reduction <add>, %99, %cst_32 [0] : vector<128x128xf32> to vector<128xf32>
    %101 = vector.shape_cast %100 : vector<128xf32> to vector<1x128xf32>
    %cst_33 = arith.constant 0.000000e+00 : f32
    %102 = vector.broadcast %cst_33 : f32 to vector<1x128xf32>
    %103 = arith.subf %102, %101 : vector<1x128xf32>
    %cst_34 = arith.constant 0.000000e+00 : f32
    %104 = vector.broadcast %cst_34 : f32 to vector<1x128xf32>
    %105 = arith.minimumf %103, %104 : vector<1x128xf32>
    %106 = math.absf %103 : vector<1x128xf32>
    %cst_35 = arith.constant 0.000000e+00 : f32
    %107 = vector.broadcast %cst_35 : f32 to vector<1x128xf32>
    %108 = arith.subf %107, %106 : vector<1x128xf32>
    %109 = math.exp %108 : vector<1x128xf32>
    %110 = math.log1p %109 : vector<1x128xf32>
    %111 = arith.subf %105, %110 : vector<1x128xf32>
    %112 = arith.addf %94, %111 : vector<1x128xf32>
    %113 = vector.extract_strided_slice %11 {offsets = [6, 0], sizes = [1, 128], strides = [1, 1]} : vector<12x128xi32> to vector<1x128xi32>
    %114 = vector.broadcast %113 : vector<1x128xi32> to vector<128x128xi32>
    %115 = arith.cmpi eq, %3, %114 : vector<128x128xi32>
    %cst_36 = arith.constant 0.000000e+00 : f32
    %116 = vector.broadcast %cst_36 : f32 to vector<128x128xf32>
    %117 = arith.select %115, %9, %116 : vector<128x128xi1>, vector<128x128xf32>
    %cst_37 = arith.constant dense<0.000000e+00> : vector<128xf32>
    %118 = vector.multi_reduction <add>, %117, %cst_37 [0] : vector<128x128xf32> to vector<128xf32>
    %119 = vector.shape_cast %118 : vector<128xf32> to vector<1x128xf32>
    %cst_38 = arith.constant 0.000000e+00 : f32
    %120 = vector.broadcast %cst_38 : f32 to vector<1x128xf32>
    %121 = arith.subf %120, %119 : vector<1x128xf32>
    %cst_39 = arith.constant 0.000000e+00 : f32
    %122 = vector.broadcast %cst_39 : f32 to vector<1x128xf32>
    %123 = arith.minimumf %121, %122 : vector<1x128xf32>
    %124 = math.absf %121 : vector<1x128xf32>
    %cst_40 = arith.constant 0.000000e+00 : f32
    %125 = vector.broadcast %cst_40 : f32 to vector<1x128xf32>
    %126 = arith.subf %125, %124 : vector<1x128xf32>
    %127 = math.exp %126 : vector<1x128xf32>
    %128 = math.log1p %127 : vector<1x128xf32>
    %129 = arith.subf %123, %128 : vector<1x128xf32>
    %130 = arith.addf %112, %129 : vector<1x128xf32>
    %131 = vector.extract_strided_slice %11 {offsets = [7, 0], sizes = [1, 128], strides = [1, 1]} : vector<12x128xi32> to vector<1x128xi32>
    %132 = vector.broadcast %131 : vector<1x128xi32> to vector<128x128xi32>
    %133 = arith.cmpi eq, %3, %132 : vector<128x128xi32>
    %cst_41 = arith.constant 0.000000e+00 : f32
    %134 = vector.broadcast %cst_41 : f32 to vector<128x128xf32>
    %135 = arith.select %133, %9, %134 : vector<128x128xi1>, vector<128x128xf32>
    %cst_42 = arith.constant dense<0.000000e+00> : vector<128xf32>
    %136 = vector.multi_reduction <add>, %135, %cst_42 [0] : vector<128x128xf32> to vector<128xf32>
    %137 = vector.shape_cast %136 : vector<128xf32> to vector<1x128xf32>
    %cst_43 = arith.constant 0.000000e+00 : f32
    %138 = vector.broadcast %cst_43 : f32 to vector<1x128xf32>
    %139 = arith.subf %138, %137 : vector<1x128xf32>
    %cst_44 = arith.constant 0.000000e+00 : f32
    %140 = vector.broadcast %cst_44 : f32 to vector<1x128xf32>
    %141 = arith.minimumf %139, %140 : vector<1x128xf32>
    %142 = math.absf %139 : vector<1x128xf32>
    %cst_45 = arith.constant 0.000000e+00 : f32
    %143 = vector.broadcast %cst_45 : f32 to vector<1x128xf32>
    %144 = arith.subf %143, %142 : vector<1x128xf32>
    %145 = math.exp %144 : vector<1x128xf32>
    %146 = math.log1p %145 : vector<1x128xf32>
    %147 = arith.subf %141, %146 : vector<1x128xf32>
    %148 = arith.addf %130, %147 : vector<1x128xf32>
    %149 = vector.extract_strided_slice %11 {offsets = [8, 0], sizes = [1, 128], strides = [1, 1]} : vector<12x128xi32> to vector<1x128xi32>
    %150 = vector.broadcast %149 : vector<1x128xi32> to vector<128x128xi32>
    %151 = arith.cmpi eq, %3, %150 : vector<128x128xi32>
    %cst_46 = arith.constant 0.000000e+00 : f32
    %152 = vector.broadcast %cst_46 : f32 to vector<128x128xf32>
    %153 = arith.select %151, %9, %152 : vector<128x128xi1>, vector<128x128xf32>
    %cst_47 = arith.constant dense<0.000000e+00> : vector<128xf32>
    %154 = vector.multi_reduction <add>, %153, %cst_47 [0] : vector<128x128xf32> to vector<128xf32>
    %155 = vector.shape_cast %154 : vector<128xf32> to vector<1x128xf32>
    %cst_48 = arith.constant 0.000000e+00 : f32
    %156 = vector.broadcast %cst_48 : f32 to vector<1x128xf32>
    %157 = arith.subf %156, %155 : vector<1x128xf32>
    %cst_49 = arith.constant 0.000000e+00 : f32
    %158 = vector.broadcast %cst_49 : f32 to vector<1x128xf32>
    %159 = arith.minimumf %157, %158 : vector<1x128xf32>
    %160 = math.absf %157 : vector<1x128xf32>
    %cst_50 = arith.constant 0.000000e+00 : f32
    %161 = vector.broadcast %cst_50 : f32 to vector<1x128xf32>
    %162 = arith.subf %161, %160 : vector<1x128xf32>
    %163 = math.exp %162 : vector<1x128xf32>
    %164 = math.log1p %163 : vector<1x128xf32>
    %165 = arith.subf %159, %164 : vector<1x128xf32>
    %166 = arith.addf %148, %165 : vector<1x128xf32>
    %167 = vector.extract_strided_slice %11 {offsets = [9, 0], sizes = [1, 128], strides = [1, 1]} : vector<12x128xi32> to vector<1x128xi32>
    %168 = vector.broadcast %167 : vector<1x128xi32> to vector<128x128xi32>
    %169 = arith.cmpi eq, %3, %168 : vector<128x128xi32>
    %cst_51 = arith.constant 0.000000e+00 : f32
    %170 = vector.broadcast %cst_51 : f32 to vector<128x128xf32>
    %171 = arith.select %169, %9, %170 : vector<128x128xi1>, vector<128x128xf32>
    %cst_52 = arith.constant dense<0.000000e+00> : vector<128xf32>
    %172 = vector.multi_reduction <add>, %171, %cst_52 [0] : vector<128x128xf32> to vector<128xf32>
    %173 = vector.shape_cast %172 : vector<128xf32> to vector<1x128xf32>
    %cst_53 = arith.constant 0.000000e+00 : f32
    %174 = vector.broadcast %cst_53 : f32 to vector<1x128xf32>
    %175 = arith.subf %174, %173 : vector<1x128xf32>
    %cst_54 = arith.constant 0.000000e+00 : f32
    %176 = vector.broadcast %cst_54 : f32 to vector<1x128xf32>
    %177 = arith.minimumf %175, %176 : vector<1x128xf32>
    %178 = math.absf %175 : vector<1x128xf32>
    %cst_55 = arith.constant 0.000000e+00 : f32
    %179 = vector.broadcast %cst_55 : f32 to vector<1x128xf32>
    %180 = arith.subf %179, %178 : vector<1x128xf32>
    %181 = math.exp %180 : vector<1x128xf32>
    %182 = math.log1p %181 : vector<1x128xf32>
    %183 = arith.subf %177, %182 : vector<1x128xf32>
    %184 = arith.addf %166, %183 : vector<1x128xf32>
    %185 = vector.extract_strided_slice %11 {offsets = [10, 0], sizes = [1, 128], strides = [1, 1]} : vector<12x128xi32> to vector<1x128xi32>
    %186 = vector.broadcast %185 : vector<1x128xi32> to vector<128x128xi32>
    %187 = arith.cmpi eq, %3, %186 : vector<128x128xi32>
    %cst_56 = arith.constant 0.000000e+00 : f32
    %188 = vector.broadcast %cst_56 : f32 to vector<128x128xf32>
    %189 = arith.select %187, %9, %188 : vector<128x128xi1>, vector<128x128xf32>
    %cst_57 = arith.constant dense<0.000000e+00> : vector<128xf32>
    %190 = vector.multi_reduction <add>, %189, %cst_57 [0] : vector<128x128xf32> to vector<128xf32>
    %191 = vector.shape_cast %190 : vector<128xf32> to vector<1x128xf32>
    %cst_58 = arith.constant 0.000000e+00 : f32
    %192 = vector.broadcast %cst_58 : f32 to vector<1x128xf32>
    %193 = arith.subf %192, %191 : vector<1x128xf32>
    %cst_59 = arith.constant 0.000000e+00 : f32
    %194 = vector.broadcast %cst_59 : f32 to vector<1x128xf32>
    %195 = arith.minimumf %193, %194 : vector<1x128xf32>
    %196 = math.absf %193 : vector<1x128xf32>
    %cst_60 = arith.constant 0.000000e+00 : f32
    %197 = vector.broadcast %cst_60 : f32 to vector<1x128xf32>
    %198 = arith.subf %197, %196 : vector<1x128xf32>
    %199 = math.exp %198 : vector<1x128xf32>
    %200 = math.log1p %199 : vector<1x128xf32>
    %201 = arith.subf %195, %200 : vector<1x128xf32>
    %202 = arith.addf %184, %201 : vector<1x128xf32>
    %203 = vector.extract_strided_slice %11 {offsets = [11, 0], sizes = [1, 128], strides = [1, 1]} : vector<12x128xi32> to vector<1x128xi32>
    %204 = vector.broadcast %203 : vector<1x128xi32> to vector<128x128xi32>
    %205 = arith.cmpi eq, %3, %204 : vector<128x128xi32>
    %cst_61 = arith.constant 0.000000e+00 : f32
    %206 = vector.broadcast %cst_61 : f32 to vector<128x128xf32>
    %207 = arith.select %205, %9, %206 : vector<128x128xi1>, vector<128x128xf32>
    %cst_62 = arith.constant dense<0.000000e+00> : vector<128xf32>
    %208 = vector.multi_reduction <add>, %207, %cst_62 [0] : vector<128x128xf32> to vector<128xf32>
    %209 = vector.shape_cast %208 : vector<128xf32> to vector<1x128xf32>
    %cst_63 = arith.constant 0.000000e+00 : f32
    %210 = vector.broadcast %cst_63 : f32 to vector<1x128xf32>
    %211 = arith.subf %210, %209 : vector<1x128xf32>
    %cst_64 = arith.constant 0.000000e+00 : f32
    %212 = vector.broadcast %cst_64 : f32 to vector<1x128xf32>
    %213 = arith.minimumf %211, %212 : vector<1x128xf32>
    %214 = math.absf %211 : vector<1x128xf32>
    %cst_65 = arith.constant 0.000000e+00 : f32
    %215 = vector.broadcast %cst_65 : f32 to vector<1x128xf32>
    %216 = arith.subf %215, %214 : vector<1x128xf32>
    %217 = math.exp %216 : vector<1x128xf32>
    %218 = math.log1p %217 : vector<1x128xf32>
    %219 = arith.subf %213, %218 : vector<1x128xf32>
    %220 = arith.addf %202, %219 : vector<1x128xf32>
    %cst_66 = arith.constant 0.000000e+00 : f32
    %221 = vector.broadcast %cst_66 : f32 to vector<1x128xf32>
    %222 = arith.subf %221, %220 : vector<1x128xf32>
    %c0_67 = arith.constant 0 : index
    %c0_68 = arith.constant 0 : index
    %223 = vector.load %arg5[%c0_67, %c0_68] : memref<1x128xf32, #tpu.memory_space<vmem>>, vector<1x128xf32>
    tpu.vector_store %arg5[%c0_67, %c0_68], %222 {strides = array<i32>} : memref<1x128xf32, #tpu.memory_space<vmem>>, vector<1x128xf32>,
    return
  }
  func.func @transform_0(%arg0: i32) -> (i32, i32) {
    %c0_i32 = arith.constant 0 : i32
    %c0_i32_0 = arith.constant 0 : i32
    return %arg0, %c0_i32 : i32, i32
  }
  func.func @transform_1(%arg0: i32) -> (i32, i32, i32) {
    %c0_i32 = arith.constant 0 : i32
    %c0_i32_0 = arith.constant 0 : i32
    %c0_i32_1 = arith.constant 0 : i32
    return %arg0, %c0_i32, %c0_i32_0 : i32, i32, i32
  }
  func.func @transform_2(%arg0: i32) -> (i32, i32) {
    %c0_i32 = arith.constant 0 : i32
    %c0_i32_0 = arith.constant 0 : i32
    %c0_i32_1 = arith.constant 0 : i32
    return %c0_i32, %c0_i32_0 : i32, i32
  }
  func.func @transform_3(%arg0: i32) -> (i32, i32) {
    %c0_i32 = arith.constant 0 : i32
    %c0_i32_0 = arith.constant 0 : i32
    %c0_i32_1 = arith.constant 0 : i32
    return %c0_i32, %c0_i32_0 : i32, i32
  }
  func.func @transform_4(%arg0: i32) -> (i32, i32) {
    %c0_i32 = arith.constant 0 : i32
    %c0_i32_0 = arith.constant 0 : i32
    return %c0_i32, %arg0 : i32, i32
  }
}

</mosaic_0001>

<bundles_post_ra>
// kernel: tpu_custom_call.1
= control target key start
LH: loop header
LB: loop body
LE: loop exit
PB: predicated region body
PF: predicated region fallthrough
CT: control target
= control target key end

     0   :  { %vm50_vm0 = vcmask 261120   ;;  %v292_v3 = vlaneseq  ;;  %s3423_s0 = inlined_call_operand.vmem [shape: s32[1,128], index: 0, kind: input, shape index: {}]   ;;  %s3424_s1 = inlined_call_operand.vmem [shape: s32[1,12,128], index: 1, kind: input, shape index: {}]   ;;  %s3425_s2 = inlined_call_operand.vmem [shape: f32[128,32], index: 2, kind: input, shape index: {}]   ;;  %s3426_s3 = inlined_call_operand.vmem [shape: f32[128,32], index: 3, kind: input, shape index: {}]   ;;  %s3427_s4 = inlined_call_operand.hbm [shape: f32[1,128], index: 4, kind: output, shape index: {}]  }
   0x1   :  { %v18_v0 = vld [vmem:[%s3425_s2] sm:$0xff]  ;;  %v19_v1 = vld [vmem:[%s3425_s2 + $0x8] sm:$0xff]  ;;  %v20_v2 = vld [vmem:[%s3425_s2 + $0x10] sm:$0xff] }
   0x2   :  { %v1650_v4 = vpack.c.bf16 %v19_v1, %v18_v0  ;;  %vm1842_vm1 = vmpackc.low %vm50_vm0, %vm50_vm0  ;;  %v21_v6 = vld [vmem:[%s3425_s2 + $0x18] sm:$0xff]  ;;  %v1853_v8 = vshrl.u32 %v292_v3, 7  ;;  %v34_v9 = vld [vmem:[%s3426_s3] sm:$0xff] }
   0x3   :  { %v1656_v7 = vpack.c.bf16 %v21_v6, %v20_v2  ;;  %v22_v10 = vld [vmem:[%s3425_s2 + $0x20] sm:$0xff]  ;;  %v23_v11 = vld [vmem:[%s3425_s2 + $0x28] sm:$0xff]  ;;  %1570 = vmatprep.mubr.msk.f32.mxu0 %vm50_vm0, %v34_v9 }
   0x4   :  { %1652 = vmatprep.subr.msk.bf16.mxu0 %vm1842_vm1, %v1650_v4  ;;  %v1868_v12 = vadd.s32 8, %v1853_v8  ;;  %v1871_v13 = vadd.s32 16, %v1853_v8  ;;  %v1874_v14 = vadd.s32 24, %v1853_v8  ;;  %v1662_v15 = vpack.c.bf16 %v23_v11, %v22_v10  ;;  %v1885_v18 = vld [vmem:[%s3423_s0] ss:$0 sm:$0xff] }
   0x5   :  { %1655 = vmatpush3.bf16.xpose.msk.msra.mxu0 %vm1842_vm1, %v1650_v4  ;;  %v1877_v16 = vadd.s32 32, %v1853_v8  ;;  %v1880_v17 = vadd.s32 40, %v1853_v8 }
   0x6   :  { %1658 = vmatprep.subr.msk.bf16.mxu0 %vm1842_vm1, %v1656_v7  ;;  %3452 = vst [vmem:[#allocation5_spill] sm:$0xff] %v1871_v13 }
   0x7   :  { %9 = vsyncpa [#allocation3], 0  ;;  %vm314_vm2 = vcmp.eq.s32.totalorder %v1853_v8, %v1885_v18  ;;  %vm315_vm3 = vcmp.eq.s32.totalorder %v1868_v12, %v1885_v18  ;;  %vm316_vm4 = vcmp.eq.s32.totalorder %v1871_v13, %v1885_v18  ;;  %vm317_vm5 = vcmp.eq.s32.totalorder %v1874_v14, %v1885_v18  ;;  %v24_v19 = vld [vmem:[%s3425_s2 + $0x30] sm:$0xff]  ;;  %v25_v20 = vld [vmem:[%s3425_s2 + $0x38] sm:$0xff] }
   0x8   :  { %vm1698_vm6 = vmpackc.low %vm315_vm3, %vm314_vm2  ;;  %v1804_v21 = vmov 1.0|1.0   ;;  %vm318_vm8 = vcmp.eq.s32.totalorder %v1877_v16, %v1885_v18  ;;  %vm319_vm9 = vcmp.eq.s32.totalorder %v1880_v17, %v1885_v18  ;;  %v1910_v22 = vadd.s32 48, %v1853_v8  ;;  %v26_v28 = vld [vmem:[%s3425_s2 + $0x40] sm:$0xff]  ;;  %v27_v29 = vld [vmem:[%s3425_s2 + $0x48] sm:$0xff] }
   0x9   :  { %1699 = vmatprep.subr.msk.bf16.mxu1 %vm1698_vm6, %v1804_v21  ;;  %vm1702_vm7 = vmpackc.low %vm317_vm5, %vm316_vm4  ;;  %v1913_v23 = vadd.s32 56, %v1853_v8  ;;  %v1668_v24 = vpack.c.bf16 %v25_v20, %v24_v19  ;;  %v1924_v26 = vadd.s32 64, %v1853_v8  ;;  %v1927_v27 = vadd.s32 72, %v1853_v8  ;;  %v28_v36 = vld [vmem:[%s3425_s2 + $0x50] sm:$0xff]  ;;  %v29_v37 = vld [vmem:[%s3425_s2 + $0x58] sm:$0xff] }
   0xa   :  { %1701 = vmatpush3.bf16.msk.msra.mxu1 %vm1698_vm6, %v1804_v21  ;;  %vm1915_vm10 = vmpackc.low %vm319_vm9, %vm318_vm8  ;;  %vm320_vm11 = vcmp.eq.s32.totalorder %v1910_v22, %v1885_v18  ;;  %v1946_v30 = vadd.s32 80, %v1853_v8  ;;  %v1949_v31 = vadd.s32 88, %v1853_v8  ;;  %v1674_v32 = vpack.c.bf16 %v27_v29, %v26_v28  ;;  %v30_v41 = vld [vmem:[%s3425_s2 + $0x60] sm:$0xff]  ;;  %v31_v42 = vld [vmem:[%s3425_s2 + $0x68] sm:$0xff] }
   0xb   :  { %1703 = vmatprep.subr.msk.bf16.mxu1 %vm1702_vm7, %v1804_v21  ;;  %vm321_vm12 = vcmp.eq.s32.totalorder %v1913_v23, %v1885_v18  ;;  %vm322_vm14 = vcmp.eq.s32.totalorder %v1924_v26, %v1885_v18  ;;  %vm323_vm15 = vcmp.eq.s32.totalorder %v1927_v27, %v1885_v18  ;;  %v1962_v34 = vadd.s32 96, %v1853_v8  ;;  %v32_v44 = vld [vmem:[%s3425_s2 + $0x70] sm:$0xff]  ;;  %v33_v45 = vld [vmem:[%s3425_s2 + $0x78] sm:$0xff]  ;;  %v35_v47 = vld [vmem:[%s3426_s3 + $0x8] sm:$0xff] }
   0xc   :  { %vm1710_vm13 = vmpackc.low %vm321_vm12, %vm320_vm11  ;;  %vm324_vm3 = vcmp.eq.s32.totalorder %v1946_v30, %v1885_v18  ;;  %vm325_vm4 = vcmp.eq.s32.totalorder %v1949_v31, %v1885_v18  ;;  %v1965_v35 = vadd.s32 104, %v1853_v8  ;;  %v1984_v38 = vadd.s32 112, %v1853_v8  ;;  %v36_v48 = vld [vmem:[%s3426_s3 + $0x10] sm:$0xff]  ;;  %v37_v49 = vld [vmem:[%s3426_s3 + $0x18] sm:$0xff] }
   0xd   :  { %1661 = vmatpush3.bf16.xpose.msk.msra.mxu0 %vm1842_vm1, %v1656_v7  ;;  %vm1953_vm2 = vmpackc.low %vm323_vm15, %vm322_vm14  ;;  %vm326_vm6 = vcmp.eq.s32.totalorder %v1962_v34, %v1885_v18  ;;  %v1987_v39 = vadd.s32 120, %v1853_v8  ;;  %v1680_v40 = vpack.c.bf16 %v29_v37, %v28_v36  ;;  %v1686_v43 = vpack.c.bf16 %v31_v42, %v30_v41  ;;  %v38_v50 = vld [vmem:[%s3426_s3 + $0x20] sm:$0xff]  ;;  %v39_v51 = vld [vmem:[%s3426_s3 + $0x28] sm:$0xff] }
   0xe   :  { %1664 = vmatprep.subr.msk.bf16.mxu0 %vm1842_vm1, %v1662_v15  ;;  %1705 = vmatpush3.bf16.msk.msra.mxu1 %vm1702_vm7, %v1804_v21  ;;  %vm1718_vm5 = vmpackc.low %vm325_vm4, %vm324_vm3  ;;  %vm327_vm7 = vcmp.eq.s32.totalorder %v1965_v35, %v1885_v18  ;;  %vm328_vm9 = vcmp.eq.s32.totalorder %v1984_v38, %v1885_v18  ;;  %v1692_v46 = vpack.c.bf16 %v33_v45, %v32_v44  ;;  %v40_v52 = vld [vmem:[%s3426_s3 + $0x30] sm:$0xff]  ;;  %v41_v53 = vld [vmem:[%s3426_s3 + $0x38] sm:$0xff]  ;;  %v511_v20 = vsub.s32 0, %v1853_v8 }
   0xf   :  { %1707 = vmatprep.subr.msk.bf16.mxu1 %vm1915_vm10, %v1804_v21  ;;  %vm1722_vm8 = vmpackc.low %vm327_vm7, %vm326_vm6  ;;  %v42_v54 = vld [vmem:[%s3426_s3 + $0x40] sm:$0xff]  ;;  %v43_v55 = vld [vmem:[%s3426_s3 + $0x48] sm:$0xff]  ;;  %v730_v25 = vsub.s32 3, %v1853_v8  ;;  %v803_v29 = vsub.s32 4, %v1853_v8  ;;  %v951_v33 = vsub.s32 6, %v1853_v8  ;;  %v1025_v36 = vsub.s32 7, %v1853_v8 }
  0x10   :  { %v44_v56 = vld [vmem:[%s3426_s3 + $0x50] sm:$0xff]  ;;  %v45_v57 = vld [vmem:[%s3426_s3 + $0x58] sm:$0xff]  ;;  %v46_v58 = vld [vmem:[%s3426_s3 + $0x60] sm:$0xff] }
  0x11   :  { %v47_v59 = vld [vmem:[%s3426_s3 + $0x68] sm:$0xff]  ;;  %v48_v60 = vld [vmem:[%s3426_s3 + $0x70] sm:$0xff]  ;;  %v49_v61 = vld [vmem:[%s3426_s3 + $0x78] sm:$0xff] }
  0x12   :  { %1709 = vmatpush3.bf16.msk.msra.mxu1 %vm1915_vm10, %v1804_v21  ;;  %vm329_vm10 = vcmp.eq.s32.totalorder %v1987_v39, %v1885_v18  ;;  %v507_v28 = vld [vmem:[%s3424_s1] sm:$0xff]  ;;  %v508_v37 = vld [vmem:[%s3424_s1 + $0x8] sm:$0xf]  ;;  %s1805_s1 = smov [#allocation2]  }
  0x13   :  { %1711 = vmatprep.subr.msk.bf16.mxu1 %vm1710_vm13, %v1804_v21  ;;  %vm1726_vm11 = vmpackc.low %vm329_vm10, %vm328_vm9  ;;  %v2103_v44 = vrot.slane %v507_v28, %v803_v29  ;;  %s1401_s28 = sshll.u32 %s1805_s1, 4  ;;  %s1402_s28 = int_to_ptr.vmem [resolvable:$true] %s1401_s28 }
  0x14   :  { %s1780_s29 = scalar_lea.vmem %s1402_s28, 16  ;;  %s1784_s30 = scalar_lea.vmem %s1402_s28, 32 }
  0x15   :  { %1667 = vmatpush3.bf16.xpose.msk.msra.mxu0 %vm1842_vm1, %v1662_v15  ;;  %vm806_vm14 = vcmp.eq.s32.totalorder %v1868_v12, %v2103_v44  ;;  %p1781_p0 = scmp.ne.s32.totalorder %s1402_s28, %s1780_s29  ;;  %p1785_p1 = scmp.lt.s32.totalorder %s1402_s28, %s1402_s28 }
  0x16   :  { %1670 = vmatprep.subr.msk.bf16.mxu0 %vm1842_vm1, %v1668_v24  ;;  %1713 = vmatpush3.bf16.msk.msra.mxu1 %vm1710_vm13, %v1804_v21  ;;  %p1786_p2 = scmp.lt.s32.totalorder %s1784_s30, %s1780_s29 }
  0x17   :  { %1715 = vmatprep.subr.msk.bf16.mxu1 %vm1953_vm2, %v1804_v21 }
  0x18   :  { %p1787_p3 = por %p1786_p2, %p1785_p1 }
  0x1a   :  { %1717 = vmatpush3.bf16.msk.msra.mxu1 %vm1953_vm2, %v1804_v21  ;;  %p1788_p4 = pnand %p1787_p3, %p1781_p0 }
  0x1b   :  { %1719 = vmatprep.subr.msk.bf16.mxu1 %vm1718_vm5, %v1804_v21 }
  0x1d   :  { %1673 = vmatpush3.bf16.xpose.msk.msra.mxu0 %vm1842_vm1, %v1668_v24  ;;  %v657_v24 = vsub.s32 2, %v1853_v8 }
  0x1e   :  { %1676 = vmatprep.subr.msk.bf16.mxu0 %vm1842_vm1, %v1674_v32  ;;  %1721 = vmatpush3.bf16.msk.msra.mxu1 %vm1718_vm5, %v1804_v21 }
  0x1f   :  { %1723 = vmatprep.subr.msk.bf16.mxu1 %vm1722_vm8, %v1804_v21  ;;  %v2099_v42 = vrot.slane %v507_v28, %v657_v24 }
  0x21   :  { %vm660_vm12 = vcmp.eq.s32.totalorder %v1868_v12, %v2099_v42 }
  0x22   :  { %1725 = vmatpush3.bf16.msk.msra.mxu1 %vm1722_vm8, %v1804_v21 }
  0x23   :  { %1727 = vmatprep.subr.msk.bf16.mxu1 %vm1726_vm11, %v1804_v21 }
  0x25   :  { %1679 = vmatpush3.bf16.xpose.msk.msra.mxu0 %vm1842_vm1, %v1674_v32  ;;  %v877_v32 = vsub.s32 5, %v1853_v8 }
  0x26   :  { %1682 = vmatprep.subr.msk.bf16.mxu0 %vm1842_vm1, %v1680_v40  ;;  %1729 = vmatpush3.bf16.msk.msra.mxu1 %vm1726_vm11, %v1804_v21  ;;  %v584_v21 = vsub.s32 1, %v1853_v8 }
  0x27   :  { %v2105_v45 = vrot.slane %v507_v28, %v877_v32 }
  0x28   :  { %v2097_v41 = vrot.slane %v507_v28, %v584_v21 }
  0x29   :  { %vm880_vm15 = vcmp.eq.s32.totalorder %v1868_v12, %v2105_v45  ;;  %vm879_vm6 = vcmp.eq.s32.totalorder %v1853_v8, %v2105_v45 }
  0x2d   :  { %1685 = vmatpush3.bf16.xpose.msk.msra.mxu0 %vm1842_vm1, %v1680_v40  ;;  %v2095_v40 = vrot.slane %v507_v28, %v511_v20 }
  0x2e   :  { %1688 = vmatprep.subr.msk.bf16.mxu0 %vm1842_vm1, %v1686_v43 }
  0x2f   :  { %vm515_vm5 = vcmp.eq.s32.totalorder %v1871_v13, %v2095_v40 }
  0x35   :  { %1691 = vmatpush3.bf16.xpose.msk.msra.mxu0 %vm1842_vm1, %v1686_v43  ;;  %v2101_v43 = vrot.slane %v507_v28, %v730_v25 }
  0x36   :  { %1694 = vmatprep.subr.msk.bf16.mxu0 %vm1842_vm1, %v1692_v46 }
  0x37   :  { %vm733_vm13 = vcmp.eq.s32.totalorder %v1868_v12, %v2101_v43 }
  0x3d   :  { %1697 = vmatpush3.bf16.xpose.msk.msra.mxu0 %vm1842_vm1, %v1692_v46  ;;  %v2107_v46 = vrot.slane %v507_v28, %v951_v33  ;;  %vm587_vm1 = vcmp.eq.s32.totalorder %v1868_v12, %v2097_v41 }
  0x3f   :  { %vm954_vm2 = vcmp.eq.s32.totalorder %v1868_v12, %v2107_v46  ;;  %vm953_vm7 = vcmp.eq.s32.totalorder %v1853_v8, %v2107_v46 }
  0x44   :  { %1571 = vmatmul.mubr.msk.f32.vlgmr.msra.gmra.mrb[0].mxu0 %vm50_vm0, %v35_v47  ;;  %v2109_v47 = vrot.slane %v507_v28, %v1025_v36 }
  0x45   :  { %1573 = vmatprep.mubr.msk.f32.mxu0 %vm50_vm0, %v36_v48  ;;  %v2111_v48 = vrot.slane %v508_v37, %v511_v20 }
  0x46   :  { %vm1028_vm3 = vcmp.eq.s32.totalorder %v1868_v12, %v2109_v47  ;;  %vm1027_vm8 = vcmp.eq.s32.totalorder %v1853_v8, %v2109_v47 }
  0x47   :  { %vm1102_vm4 = vcmp.eq.s32.totalorder %v1868_v12, %v2111_v48  ;;  %vm1101_vm9 = vcmp.eq.s32.totalorder %v1853_v8, %v2111_v48 }
  0x48   :  { %1574 = vmatmul.mubr.msk.f32.gmra.mrb[2].mxu0 %vm50_vm0, %v37_v49  ;;  %v2113_v49 = vrot.slane %v508_v37, %v584_v21 }
  0x49   :  { %1576 = vmatprep.mubr.msk.f32.mxu0 %vm50_vm0, %v38_v50  ;;  %v2115_v50 = vrot.slane %v508_v37, %v657_v24 }
  0x4a   :  { %vm1175_vm10 = vcmp.eq.s32.totalorder %v1853_v8, %v2113_v49 }
  0x4b   :  { %3457 = vst [vmem:[#allocation6_spill] sm:$0xff] %v2115_v50  ;;  %vm1249_vm11 = vcmp.eq.s32.totalorder %v1853_v8, %v2115_v50 }
  0x4c   :  { %1577 = vmatmul.mubr.msk.f32.gmra.mrb[4].mxu0 %vm50_vm0, %v39_v51  ;;  %v2117_v51 = vrot.slane %v508_v37, %v730_v25 }
  0x4d   :  { %1579 = vmatprep.mubr.msk.f32.mxu0 %vm50_vm0, %v40_v52 }
  0x4e   :  { %3458 = vst [vmem:[#allocation7_spill] sm:$0xff] %v2117_v51 }
  0x50   :  { %1580 = vmatmul.mubr.msk.f32.gmra.mrb[6].mxu0 %vm50_vm0, %v41_v53 }
  0x51   :  { %1582 = vmatprep.mubr.msk.f32.mxu0 %vm50_vm0, %v42_v54 }
  0x54   :  { %1583 = vmatmul.mubr.msk.f32.gmra.mrb[8].mxu0 %vm50_vm0, %v43_v55 }
  0x55   :  { %1585 = vmatprep.mubr.msk.f32.mxu0 %vm50_vm0, %v44_v56 }
  0x58   :  { %1586 = vmatmul.mubr.msk.f32.gmra.mrb[10].mxu0 %vm50_vm0, %v45_v57 }
  0x59   :  { %1588 = vmatprep.mubr.msk.f32.mxu0 %vm50_vm0, %v46_v58 }
  0x5c   :  { %1589 = vmatmul.mubr.msk.f32.gmra.mrb[12].mxu0 %vm50_vm0, %v47_v59 }
  0x5d   :  { %1591 = vmatprep.mubr.msk.f32.mxu0 %vm50_vm0, %v48_v60 }
  0x60   :  { %1592 = vmatmul.mubr.msk.f32.gmra.mrb[14].mxu0 %vm50_vm0, %v49_v61  ;;  %vm514_vm0 = vcmp.eq.s32.totalorder %v1868_v12, %v2095_v40 }
 0x117   :  { %v1572_v62 = vpop.f32.mrb[0].mxu0 }
 0x118   :  { %v213_v63 = vpop.f32.mrb[1].mxu0 }
 0x119   :  { %1626 = vmatprep.mubr.f32.mxu1 %v213_v63 }
 0x11a   :  { %1627 = vmatmul.mubr.f32.vlgmr.msra.gmra.mrb[0].mxu1 %v1572_v62 }
 0x11b   :  { %v1575_v0 = vpop.f32.mrb[2].mxu0 }
 0x11c   :  { %v223_v1 = vpop.f32.mrb[3].mxu0 }
 0x11d   :  { %1629 = vmatprep.mubr.f32.mxu1 %v223_v1 }
 0x11e   :  { %1630 = vmatmul.mubr.f32.gmra.mrb[2].mxu1 %v1575_v0 }
 0x11f   :  { %v1578_v2 = vpop.f32.mrb[4].mxu0 }
 0x120   :  { %v233_v3 = vpop.f32.mrb[5].mxu0 }
 0x121   :  { %1632 = vmatprep.mubr.f32.mxu1 %v233_v3 }
 0x122   :  { %1633 = vmatmul.mubr.f32.gmra.mrb[4].mxu1 %v1578_v2 }
 0x123   :  { %v1581_v4 = vpop.f32.mrb[6].mxu0 }
 0x124   :  { %v243_v5 = vpop.f32.mrb[7].mxu0 }
 0x125   :  { %1635 = vmatprep.mubr.f32.mxu1 %v243_v5 }
 0x126   :  { %1636 = vmatmul.mubr.f32.gmra.mrb[6].mxu1 %v1581_v4 }
 0x127   :  { %v1584_v6 = vpop.f32.mrb[8].mxu0 }
 0x128   :  { %v253_v7 = vpop.f32.mrb[9].mxu0 }
 0x129   :  { %1638 = vmatprep.mubr.f32.mxu1 %v253_v7 }
 0x12a   :  { %1639 = vmatmul.mubr.f32.gmra.mrb[8].mxu1 %v1584_v6 }
 0x12b   :  { %v1587_v9 = vpop.f32.mrb[10].mxu0 }
 0x12c   :  { %v263_v10 = vpop.f32.mrb[11].mxu0 }
 0x12d   :  { %1641 = vmatprep.mubr.f32.mxu1 %v263_v10 }
 0x12e   :  { %1642 = vmatmul.mubr.f32.gmra.mrb[10].mxu1 %v1587_v9 }
 0x12f   :  { %v1590_v11 = vpop.f32.mrb[12].mxu0 }
 0x130   :  { %v273_v15 = vpop.f32.mrb[13].mxu0 }
 0x131   :  { %1644 = vmatprep.mubr.f32.mxu1 %v273_v15 }
 0x132   :  { %1645 = vmatmul.mubr.f32.gmra.mrb[12].mxu1 %v1590_v11 }
 0x133   :  { %v1593_v18 = vpop.f32.mrb[14].mxu0 }
 0x134   :  { %v283_v19 = vpop.f32.mrb[15].mxu0 }
 0x135   :  { %1647 = vmatprep.mubr.f32.mxu1 %v283_v19 }
 0x136   :  { %1648 = vmatmul.mubr.f32.gmra.mrb[14].mxu1 %v1593_v18 }
 0x1ed   :  { %v1628_v52 = vpop.f32.mrb[0].mxu1 }
 0x1ee   :  { %v530_v53 = vsel %vm514_vm0, %v1628_v52, 0.0  ;;  %v603_v54 = vsel %vm587_vm1, %v1628_v52, 0.0  ;;  %v676_v55 = vsel %vm660_vm12, %v1628_v52, 0.0  ;;  %v749_v56 = vsel %vm733_vm13, %v1628_v52, 0.0  ;;  %v428_v57 = vpop.f32.mrb[1].mxu1 }
 0x1ef   :  { %v822_v58 = vsel %vm806_vm14, %v1628_v52, 0.0  ;;  %v896_v59 = vsel %vm880_vm15, %v1628_v52, 0.0  ;;  %v970_v60 = vsel %vm954_vm2, %v1628_v52, 0.0  ;;  %v1044_v61 = vsel %vm1028_vm3, %v1628_v52, 0.0 }
 0x1f0   :  { %vm588_vm0 = vcmp.eq.s32.totalorder %v1871_v13, %v2097_v41  ;;  %vm661_vm1 = vcmp.eq.s32.totalorder %v1871_v13, %v2099_v42  ;;  %vm734_vm12 = vcmp.eq.s32.totalorder %v1871_v13, %v2101_v43  ;;  %v1118_v62 = vsel %vm1102_vm4, %v1628_v52, 0.0 }
 0x1f1   :  { %vm3459_vm13 = vcmp.eq.s32.totalorder %v1868_v12, %v2113_v49  ;;  %vm3460_vm14 = vcmp.eq.s32.totalorder %v1868_v12, %v2115_v50  ;;  %vm3461_vm15 = vcmp.eq.s32.totalorder %v1868_v12, %v2117_v51  ;;  %vm807_vm2 = vcmp.eq.s32.totalorder %v1871_v13, %v2103_v44  ;;  %v2225_v5 = vpop.f32.mrb[2].mxu1 }
 0x1f2   :  { %v1192_v63 = vsel %vm3459_vm13, %v1628_v52, 0.0  ;;  %v1266_v0 = vsel %vm3460_vm14, %v1628_v52, 0.0  ;;  %v1340_v1 = vsel %vm3461_vm15, %v1628_v52, 0.0  ;;  %vm3462_vm3 = vcmp.eq.s32.totalorder %v1853_v8, %v2095_v40  ;;  %v2229_v11 = vpop.f32.mrb[3].mxu1 }
 0x1f3   :  { %v529_v2 = vsel %vm3462_vm3, %v428_v57, 0.0  ;;  %vm3463_vm4 = vcmp.eq.s32.totalorder %v1853_v8, %v2097_v41  ;;  %vm3464_vm13 = vcmp.eq.s32.totalorder %v1853_v8, %v2099_v42  ;;  %vm3465_vm14 = vcmp.eq.s32.totalorder %v1853_v8, %v2101_v43  ;;  %3466 = vst [vmem:[#allocation8_spill] sm:$0xff] %v2229_v11 }
 0x1f4   :  { %v602_v3 = vsel %vm3463_vm4, %v428_v57, 0.0  ;;  %v675_v4 = vsel %vm3464_vm13, %v428_v57, 0.0  ;;  %v748_v12 = vsel %vm3465_vm14, %v428_v57, 0.0  ;;  %vm881_vm15 = vcmp.eq.s32.totalorder %v1871_v13, %v2105_v45 }
 0x1f5   :  { %v545_v6 = vadd.f32 %v530_v53, %v529_v2  ;;  %v618_v7 = vadd.f32 %v603_v54, %v602_v3  ;;  %v691_v9 = vadd.f32 %v676_v55, %v675_v4  ;;  %v764_v10 = vadd.f32 %v749_v56, %v748_v12  ;;  %v2267_v37 = vpop.f32.mrb[4].mxu1 }
 0x1f6   :  { %vm3467_vm3 = vcmp.eq.s32.totalorder %v1853_v8, %v2103_v44  ;;  %v895_v18 = vsel %vm879_vm6, %v428_v57, 0.0  ;;  %v969_v19 = vsel %vm953_vm7, %v428_v57, 0.0  ;;  %v1043_v20 = vsel %vm1027_vm8, %v428_v57, 0.0 }
 0x1f7   :  { %v821_v15 = vsel %vm3467_vm3, %v428_v57, 0.0  ;;  %v911_v24 = vadd.f32 %v896_v59, %v895_v18  ;;  %v985_v25 = vadd.f32 %v970_v60, %v969_v19  ;;  %v1059_v28 = vadd.f32 %v1044_v61, %v1043_v20 }
 0x1f8   :  { %v837_v21 = vadd.f32 %v822_v58, %v821_v15  ;;  %v1117_v29 = vsel %vm1101_vm9, %v428_v57, 0.0  ;;  %v1191_v32 = vsel %vm1175_vm10, %v428_v57, 0.0  ;;  %v1265_v33 = vsel %vm1249_vm11, %v428_v57, 0.0 }
 0x1f9   :  { %vm3468_vm6 = vcmp.eq.s32.totalorder %v1853_v8, %v2117_v51  ;;  %v1133_v52 = vadd.f32 %v1118_v62, %v1117_v29  ;;  %v1207_v53 = vadd.f32 %v1192_v63, %v1191_v32  ;;  %v1281_v54 = vadd.f32 %v1266_v0, %v1265_v33  ;;  %v2277_v8 = vpop.f32.mrb[5].mxu1 }
 0x1fa   :  { %v1339_v36 = vsel %vm3468_vm6, %v428_v57, 0.0  ;;  %3470 = vst [vmem:[#allocation10_spill] sm:$0xff] %v2277_v8  ;;  %vm955_vm6 = vcmp.eq.s32.totalorder %v1871_v13, %v2107_v46  ;;  %vm1029_vm10 = vcmp.eq.s32.totalorder %v1871_v13, %v2109_v47  ;;  %vm1103_vm9 = vcmp.eq.s32.totalorder %v1871_v13, %v2111_v48  ;;  %v2305_v57 = vpop.f32.mrb[6].mxu1 }
 0x1fb   :  { %v2269_v55 = vadd.f32 %v1340_v1, %v1339_v36  ;;  %vm1177_vm11 = vcmp.eq.s32.totalorder %v1871_v13, %v2113_v49  ;;  %vm1251_vm14 = vcmp.eq.s32.totalorder %v1871_v13, %v2115_v50  ;;  %vm590_vm8 = vcmp.eq.s32.totalorder %v1877_v16, %v2097_v41  ;;  %3471 = vst [vmem:[#allocation11_spill] sm:$0xff] %v2305_v57  ;;  %v2321_v62 = vpop.f32.mrb[7].mxu1 }
 0x1fc   :  { %vm663_vm7 = vcmp.eq.s32.totalorder %v1877_v16, %v2099_v42  ;;  %v531_v56 = vsel %vm515_vm5, %v2229_v11, 0.0  ;;  %vm736_vm13 = vcmp.eq.s32.totalorder %v1877_v16, %v2101_v43  ;;  %vm809_vm4 = vcmp.eq.s32.totalorder %v1877_v16, %v2103_v44 }
 0x1fd   :  { %3469 = vst [vmem:[#allocation9_spill] sm:$0xff] %v2269_v55  ;;  %vm883_vm3 = vcmp.eq.s32.totalorder %v1877_v16, %v2105_v45  ;;  %v546_v58 = vadd.f32 %v545_v6, %v531_v56  ;;  %v604_v59 = vsel %vm588_vm0, %v2229_v11, 0.0  ;;  %v677_v60 = vsel %vm661_vm1, %v2229_v11, 0.0  ;;  %v2349_v18 = vpop.f32.mrb[8].mxu1 }
 0x1fe   :  { %v750_v61 = vsel %vm734_vm12, %v2229_v11, 0.0  ;;  %vm957_vm5 = vcmp.eq.s32.totalorder %v1877_v16, %v2107_v46  ;;  %v619_v63 = vadd.f32 %v618_v7, %v604_v59  ;;  %v692_v0 = vadd.f32 %v691_v9, %v677_v60 }
 0x1ff   :  { %v765_v1 = vadd.f32 %v764_v10, %v750_v61  ;;  %v823_v2 = vsel %vm807_vm2, %v2229_v11, 0.0  ;;  %vm1031_vm0 = vcmp.eq.s32.totalorder %v1877_v16, %v2109_v47  ;;  %v897_v4 = vsel %vm881_vm15, %v2229_v11, 0.0 }
 0x200   :  { %v838_v3 = vadd.f32 %v837_v21, %v823_v2  ;;  %v971_v12 = vsel %vm955_vm6, %v2229_v11, 0.0  ;;  %v1045_v6 = vsel %vm1029_vm10, %v2229_v11, 0.0  ;;  %v912_v7 = vadd.f32 %v911_v24, %v897_v4  ;;  %v2367_v24 = vpop.f32.mrb[9].mxu1 }
 0x201   :  { %v986_v9 = vadd.f32 %v985_v25, %v971_v12  ;;  %v1060_v10 = vadd.f32 %v1059_v28, %v1045_v6  ;;  %v1119_v15 = vsel %vm1103_vm9, %v2229_v11, 0.0  ;;  %vm518_vm1 = vcmp.eq.s32.totalorder %v1880_v17, %v2095_v40  ;;  %3472 = vst [vmem:[#allocation12_spill] sm:$0xff] %v2367_v24  ;;  %v2427_v61 = vpop.f32.mrb[10].mxu1 }
 0x202   :  { %vm591_vm12 = vcmp.eq.s32.totalorder %v1880_v17, %v2097_v41  ;;  %v1134_v19 = vadd.f32 %v1133_v52, %v1119_v15  ;;  %v1193_v20 = vsel %vm1177_vm11, %v2229_v11, 0.0  ;;  %v1267_v21 = vsel %vm1251_vm14, %v2229_v11, 0.0  ;;  %v2439_v15 = vpop.f32.mrb[11].mxu1 }
 0x203   :  { %vm664_vm2 = vcmp.eq.s32.totalorder %v1880_v17, %v2099_v42  ;;  %vm1105_vm10 = vcmp.eq.s32.totalorder %v1877_v16, %v2111_v48  ;;  %vm3473_vm11 = vcmp.eq.s32.totalorder %v1874_v14, %v2095_v40  ;;  %vm3474_vm14 = vcmp.eq.s32.totalorder %v1874_v14, %v2097_v41 }
 0x204   :  { %v532_v25 = vsel %vm3473_vm11, %v2225_v5, 0.0  ;;  %v605_v28 = vsel %vm3474_vm14, %v2225_v5, 0.0  ;;  %v2377_v29 = vadd.f32 %v1207_v53, %v1193_v20  ;;  %v2379_v32 = vadd.f32 %v1281_v54, %v1267_v21 }
 0x205   :  { %vm3477_vm11 = vcmp.eq.s32.totalorder %v1874_v14, %v2099_v42  ;;  %vm3478_vm14 = vcmp.eq.s32.totalorder %v1874_v14, %v2101_v43  ;;  %vm3479_vm6 = vcmp.eq.s32.totalorder %v1874_v14, %v2103_v44  ;;  %vm3480_vm9 = vcmp.eq.s32.totalorder %v1874_v14, %v2105_v45 }
 0x206   :  { %3475 = vst [vmem:[#allocation13_spill] sm:$0xff] %v2377_v29  ;;  %3476 = vst [vmem:[#allocation14_spill] sm:$0xff] %v2379_v32  ;;  %v678_v33 = vsel %vm3477_vm11, %v2225_v5, 0.0  ;;  %v751_v36 = vsel %vm3478_vm14, %v2225_v5, 0.0  ;;  %v824_v52 = vsel %vm3479_vm6, %v2225_v5, 0.0  ;;  %v898_v53 = vsel %vm3480_vm9, %v2225_v5, 0.0 }
 0x207   :  { %vm3481_vm14 = vcmp.eq.s32.totalorder %v1874_v14, %v2107_v46  ;;  %vm3482_vm6 = vcmp.eq.s32.totalorder %v1874_v14, %v2109_v47  ;;  %vm3483_vm9 = vcmp.eq.s32.totalorder %v1874_v14, %v2111_v48  ;;  %vm3484_vm15 = vcmp.eq.s32.totalorder %v1877_v16, %v2095_v40 }
 0x208   :  { %v972_v54 = vsel %vm3481_vm14, %v2225_v5, 0.0  ;;  %v1046_v56 = vsel %vm3482_vm6, %v2225_v5, 0.0  ;;  %v1120_v59 = vsel %vm3483_vm9, %v2225_v5, 0.0  ;;  %v533_v60 = vsel %vm3484_vm15, %v2277_v8, 0.0 }
 0x209   :  { %vm738_vm11 = vcmp.eq.s32.totalorder %v1910_v22, %v2101_v43  ;;  %vm811_vm14 = vcmp.eq.s32.totalorder %v1910_v22, %v2103_v44  ;;  %v547_v2 = vadd.f32 %v546_v58, %v532_v25  ;;  %v606_v4 = vsel %vm590_vm8, %v2277_v8, 0.0 }
 0x20a   :  { %v620_v12 = vadd.f32 %v619_v63, %v605_v28  ;;  %v679_v6 = vsel %vm663_vm7, %v2277_v8, 0.0  ;;  %vm885_vm15 = vcmp.eq.s32.totalorder %v1910_v22, %v2105_v45  ;;  %v693_v20 = vadd.f32 %v692_v0, %v678_v33 }
 0x20b   :  { %v752_v58 = vsel %vm736_vm13, %v2277_v8, 0.0  ;;  %v766_v21 = vadd.f32 %v765_v1, %v751_v36  ;;  %v825_v63 = vsel %vm809_vm4, %v2277_v8, 0.0  ;;  %vm959_vm7 = vcmp.eq.s32.totalorder %v1910_v22, %v2107_v46 }
 0x20c   :  { %v548_v25 = vadd.f32 %v547_v2, %v533_v60  ;;  %v621_v28 = vadd.f32 %v620_v12, %v606_v4  ;;  %v839_v55 = vadd.f32 %v838_v3, %v824_v52  ;;  %v899_v0 = vsel %vm883_vm3, %v2277_v8, 0.0  ;;  %v2467_v3 = vpop.f32.mrb[12].mxu1 }
 0x20d   :  { %vm520_vm13 = vcmp.eq.s32.totalorder %v1913_v23, %v2095_v40  ;;  %vm593_vm8 = vcmp.eq.s32.totalorder %v1913_v23, %v2097_v41  ;;  %v694_v1 = vadd.f32 %v693_v20, %v679_v6  ;;  %v767_v33 = vadd.f32 %v766_v21, %v752_v58  ;;  %3485 = vst [vmem:[#allocation15_spill] sm:$0xff] %v2467_v3  ;;  %v2479_v4 = vpop.f32.mrb[13].mxu1 }
 0x20e   :  { %v913_v36 = vadd.f32 %v912_v7, %v898_v53  ;;  %v973_v60 = vsel %vm957_vm5, %v2277_v8, 0.0  ;;  %vm666_vm4 = vcmp.eq.s32.totalorder %v1913_v23, %v2099_v42  ;;  %vm739_vm3 = vcmp.eq.s32.totalorder %v1913_v23, %v2101_v43  ;;  %v2517_v21 = vpop.f32.mrb[14].mxu1 }
 0x20f   :  { %v840_v52 = vadd.f32 %v839_v55, %v825_v63  ;;  %v987_v2 = vadd.f32 %v986_v9, %v972_v54  ;;  %v1047_v7 = vsel %vm1031_vm0, %v2277_v8, 0.0  ;;  %v1061_v53 = vadd.f32 %v1060_v10, %v1046_v56  ;;  %3488 = vst [vmem:[#allocation16_spill] sm:$0xff] %v2517_v21 }
 0x210   :  { %vm521_vm5 = vcmp.eq.s32.totalorder %v1924_v26, %v2095_v40  ;;  %vm594_vm9 = vcmp.eq.s32.totalorder %v1924_v26, %v2097_v41  ;;  %v914_v12 = vadd.f32 %v913_v36, %v899_v0  ;;  %v1121_v55 = vsel %vm1105_vm10, %v2277_v8, 0.0 }
 0x211   :  { %v1135_v9 = vadd.f32 %v1134_v19, %v1120_v59  ;;  %vm667_vm0 = vcmp.eq.s32.totalorder %v1924_v26, %v2099_v42  ;;  %v534_v10 = vsel %vm518_vm1, %v2267_v37, 0.0  ;;  %v607_v54 = vsel %vm591_vm12, %v2267_v37, 0.0 }
 0x212   :  { %v988_v56 = vadd.f32 %v987_v2, %v973_v60  ;;  %v2497_v6 = vadd.f32 %v1061_v53, %v1047_v7  ;;  %v680_v19 = vsel %vm664_vm2, %v2267_v37, 0.0  ;;  %vm3486_vm1 = vcmp.eq.s32.totalorder %v1880_v17, %v2101_v43  ;;  %v2535_v2 = vpop.f32.mrb[15].mxu1 }
 0x213   :  { %v753_v59 = vsel %vm3486_vm1, %v2267_v37, 0.0  ;;  %vm3487_vm12 = vcmp.eq.s32.totalorder %v1880_v17, %v2103_v44  ;;  %v2513_v58 = vadd.f32 %v1135_v9, %v1121_v55  ;;  %vm3489_vm2 = vcmp.eq.s32.totalorder %v1880_v17, %v2105_v45  ;;  %3492 = vst [vmem:[#allocation17_spill] sm:$0xff] %v2535_v2 }
 0x214   :  { %v826_v20 = vsel %vm3487_vm12, %v2267_v37, 0.0  ;;  %v900_v63 = vsel %vm3489_vm2, %v2267_v37, 0.0  ;;  %vm3490_vm1 = vcmp.eq.s32.totalorder %v1880_v17, %v2107_v46  ;;  %vm3491_vm12 = vcmp.eq.s32.totalorder %v1910_v22, %v2095_v40 }
 0x215   :  { %v974_v0 = vsel %vm3490_vm1, %v2267_v37, 0.0  ;;  %v535_v36 = vsel %vm3491_vm12, %v2321_v62, 0.0  ;;  %v549_v60 = vadd.f32 %v548_v25, %v534_v10  ;;  %vm3493_vm2 = vcmp.eq.s32.totalorder %v1910_v22, %v2097_v41 }
 0x216   :  { %v608_v7 = vsel %vm3493_vm2, %v2321_v62, 0.0  ;;  %v622_v53 = vadd.f32 %v621_v28, %v607_v54  ;;  %vm3494_vm1 = vcmp.eq.s32.totalorder %v1910_v22, %v2099_v42  ;;  %v695_v25 = vadd.f32 %v694_v1, %v680_v19 }
 0x217   :  { %v681_v55 = vsel %vm3494_vm1, %v2321_v62, 0.0  ;;  %vm596_vm12 = vcmp.eq.s32.totalorder %v1946_v30, %v2097_v41  ;;  %vm886_vm6 = vcmp.eq.s32.totalorder %v1913_v23, %v2105_v45  ;;  %vm960_vm10 = vcmp.eq.s32.totalorder %v1913_v23, %v2107_v46 }
 0x218   :  { %v550_v9 = vadd.f32 %v549_v60, %v535_v36  ;;  %v754_v28 = vsel %vm738_vm11, %v2321_v62, 0.0  ;;  %v768_v10 = vadd.f32 %v767_v33, %v753_v59  ;;  %v827_v1 = vsel %vm811_vm14, %v2321_v62, 0.0 }
 0x219   :  { %vm668_vm2 = vcmp.eq.s32.totalorder %v1927_v27, %v2099_v42  ;;  %v623_v54 = vadd.f32 %v622_v53, %v608_v7  ;;  %v696_v19 = vadd.f32 %v695_v25, %v681_v55  ;;  %v841_v11 = vadd.f32 %v840_v52, %v826_v20 }
 0x21a   :  { %v901_v36 = vsel %vm885_vm15, %v2321_v62, 0.0  ;;  %vm814_vm1 = vcmp.eq.s32.totalorder %v1927_v27, %v2103_v44  ;;  %v769_v33 = vadd.f32 %v768_v10, %v754_v28  ;;  %v915_v59 = vadd.f32 %v914_v12, %v900_v63 }
 0x21b   :  { %v975_v60 = vsel %vm959_vm7, %v2321_v62, 0.0  ;;  %v989_v7 = vadd.f32 %v988_v56, %v974_v0  ;;  %vm524_vm14 = vcmp.eq.s32.totalorder %v1949_v31, %v2095_v40  ;;  %v536_v52 = vsel %vm520_vm13, %v2305_v57, 0.0 }
 0x21c   :  { %v609_v12 = vsel %vm593_vm8, %v2305_v57, 0.0  ;;  %v842_v56 = vadd.f32 %v841_v11, %v827_v1  ;;  %vm887_vm7 = vcmp.eq.s32.totalorder %v1924_v26, %v2105_v45  ;;  %vm598_vm11 = vcmp.eq.s32.totalorder %v1962_v34, %v2097_v41 }
 0x21d   :  { %v682_v20 = vsel %vm666_vm4, %v2305_v57, 0.0  ;;  %v755_v63 = vsel %vm739_vm3, %v2305_v57, 0.0  ;;  %v2601_v11 = vadd.f32 %v915_v59, %v901_v36  ;;  %v2603_v0 = vadd.f32 %v989_v7, %v975_v60 }
 0x21e   :  { %vm526_vm13 = vcmp.eq.s32.totalorder %v1965_v35, %v2095_v40  ;;  %vm527_vm8 = vcmp.eq.s32.totalorder %v1984_v38, %v2095_v40  ;;  %vm3495_vm4 = vcmp.eq.s32.totalorder %v1913_v23, %v2103_v44  ;;  %v537_v55 = vsel %vm521_vm5, %v2367_v24, 0.0 }
 0x21f   :  { %v828_v53 = vsel %vm3495_vm4, %v2305_v57, 0.0  ;;  %v551_v25 = vadd.f32 %v550_v9, %v536_v52  ;;  %v610_v28 = vsel %vm594_vm9, %v2367_v24, 0.0  ;;  %v624_v10 = vadd.f32 %v623_v54, %v609_v12 }
 0x220   :  { %v683_v1 = vsel %vm667_vm0, %v2367_v24, 0.0  ;;  %v697_v36 = vadd.f32 %v696_v19, %v682_v20  ;;  %vm3496_vm5 = vcmp.eq.s32.totalorder %v1924_v26, %v2101_v43  ;;  %v770_v60 = vadd.f32 %v769_v33, %v755_v63 }
 0x221   :  { %v756_v9 = vsel %vm3496_vm5, %v2367_v24, 0.0  ;;  %v552_v59 = vadd.f32 %v551_v25, %v537_v55  ;;  %vm3497_vm4 = vcmp.eq.s32.totalorder %v1924_v26, %v2103_v44  ;;  %v843_v7 = vadd.f32 %v842_v56, %v828_v53 }
 0x222   :  { %v829_v54 = vsel %vm3497_vm4, %v2367_v24, 0.0  ;;  %vm670_vm0 = vcmp.eq.s32.totalorder %v1949_v31, %v2099_v42  ;;  %vm3498_vm5 = vcmp.eq.s32.totalorder %v1927_v27, %v2095_v40  ;;  %v625_v52 = vadd.f32 %v624_v10, %v610_v28 }
 0x223   :  { %v538_v19 = vsel %vm3498_vm5, %v2349_v18, 0.0  ;;  %v698_v12 = vadd.f32 %v697_v36, %v683_v1  ;;  %vm673_vm9 = vcmp.eq.s32.totalorder %v1984_v38, %v2099_v42  ;;  %vm601_vm4 = vcmp.eq.s32.totalorder %v1987_v39, %v2097_v41 }
 0x224   :  { %vm3499_vm15 = vcmp.eq.s32.totalorder %v1927_v27, %v2097_v41  ;;  %v771_v56 = vadd.f32 %v770_v60, %v756_v9  ;;  %v844_v20 = vadd.f32 %v843_v7, %v829_v54  ;;  %vm3500_vm5 = vcmp.eq.s32.totalorder %v1946_v30, %v2095_v40 }
 0x225   :  { %v611_v33 = vsel %vm3499_vm15, %v2349_v18, 0.0  ;;  %v539_v63 = vsel %vm3500_vm5, %v2439_v15, 0.0  ;;  %v553_v53 = vadd.f32 %v552_v59, %v538_v19  ;;  %v612_v55 = vsel %vm596_vm12, %v2439_v15, 0.0 }
 0x226   :  { %v626_v25 = vadd.f32 %v625_v52, %v611_v33  ;;  %vm744_vm15 = vcmp.eq.s32.totalorder %v1962_v34, %v2101_v43  ;;  %v2675_v28 = vsel %vm886_vm6, %v2305_v57, 0.0  ;;  %v2681_v10 = vsel %vm960_vm10, %v2305_v57, 0.0 }
 0x227   :  { %v684_v1 = vsel %vm668_vm2, %v2349_v18, 0.0  ;;  %vm674_vm12 = vcmp.eq.s32.totalorder %v1987_v39, %v2099_v42  ;;  %vm745_vm5 = vcmp.eq.s32.totalorder %v1965_v35, %v2101_v43  ;;  %vm815_vm6 = vcmp.eq.s32.totalorder %v1946_v30, %v2103_v44 }
 0x228   :  { %vm3501_vm3 = vcmp.eq.s32.totalorder %v1927_v27, %v2101_v43  ;;  %v830_v9 = vsel %vm814_vm1, %v2349_v18, 0.0  ;;  %v554_v59 = vadd.f32 %v553_v53, %v539_v63  ;;  %v627_v60 = vadd.f32 %v626_v25, %v612_v55 }
 0x229   :  { %v757_v36 = vsel %vm3501_vm3, %v2349_v18, 0.0  ;;  %vm746_vm10 = vcmp.eq.s32.totalorder %v1984_v38, %v2101_v43  ;;  %v540_v54 = vsel %vm524_vm14, %v2427_v61, 0.0  ;;  %vm3502_vm2 = vcmp.eq.s32.totalorder %v1949_v31, %v2097_v41 }
 0x22a   :  { %v613_v7 = vsel %vm3502_vm2, %v2427_v61, 0.0  ;;  %vm3503_vm3 = vcmp.eq.s32.totalorder %v1962_v34, %v2095_v40  ;;  %v614_v52 = vsel %vm598_vm11, %v2479_v4, 0.0  ;;  %vm816_vm1 = vcmp.eq.s32.totalorder %v1949_v31, %v2103_v44 }
 0x22b   :  { %v541_v19 = vsel %vm3503_vm3, %v2479_v4, 0.0  ;;  %vm817_vm14 = vcmp.eq.s32.totalorder %v1962_v34, %v2103_v44  ;;  %v2727_v33 = vsel %vm887_vm7, %v2367_v24, 0.0  ;;  %vm3504_vm2 = vcmp.eq.s32.totalorder %v1946_v30, %v2099_v42 }
 0x22c   :  { %v685_v63 = vsel %vm3504_vm2, %v2439_v15, 0.0  ;;  %v555_v53 = vadd.f32 %v554_v59, %v540_v54  ;;  %v628_v55 = vadd.f32 %v627_v60, %v613_v7  ;;  %vm747_vm11 = vcmp.eq.s32.totalorder %v1987_v39, %v2101_v43 }
 0x22d   :  { %v542_v25 = vsel %vm526_vm13, %v2467_v3, 0.0  ;;  %v543_v32 = vsel %vm527_vm8, %v2535_v2, 0.0  ;;  %vm3505_vm7 = vcmp.eq.s32.totalorder %v1965_v35, %v2097_v41  ;;  %v699_v59 = vadd.f32 %v698_v12, %v684_v1 }
 0x22e   :  { %v615_v13 = vsel %vm3505_vm7, %v2467_v3, 0.0  ;;  %vm818_vm3 = vcmp.eq.s32.totalorder %v1965_v35, %v2103_v44  ;;  %v556_v60 = vadd.f32 %v555_v53, %v541_v19  ;;  %vm3506_vm2 = vcmp.eq.s32.totalorder %v1984_v38, %v2097_v41 }
 0x22f   :  { %v616_v54 = vsel %vm3506_vm2, %v2535_v2, 0.0  ;;  %v629_v7 = vadd.f32 %v628_v55, %v614_v52  ;;  %vm3507_vm13 = vcmp.eq.s32.totalorder %v1946_v30, %v2101_v43  ;;  %vm819_vm8 = vcmp.eq.s32.totalorder %v1984_v38, %v2103_v44 }
 0x230   :  { %v758_v51 = vsel %vm3507_vm13, %v2439_v15, 0.0  ;;  %v689_v12 = vsel %vm673_vm9, %v2535_v2, 0.0  ;;  %vm3508_vm7 = vcmp.eq.s32.totalorder %v1987_v39, %v2095_v40  ;;  %v700_v19 = vadd.f32 %v699_v59, %v685_v63 }
 0x231   :  { %v544_v1 = vsel %vm3508_vm7, %v2517_v21, 0.0  ;;  %v772_v52 = vadd.f32 %v771_v56, %v757_v36  ;;  %vm888_vm2 = vcmp.eq.s32.totalorder %v1927_v27, %v2105_v45  ;;  %v557_v53 = vadd.f32 %v556_v60, %v542_v25 }
 0x232   :  { %v630_v55 = vadd.f32 %v629_v7, %v615_v13  ;;  %v686_v29 = vsel %vm670_vm0, %v2427_v61, 0.0  ;;  %vm3509_vm9 = vcmp.eq.s32.totalorder %v1962_v34, %v2099_v42  ;;  %vm889_vm13 = vcmp.eq.s32.totalorder %v1946_v30, %v2105_v45 }
 0x233   :  { %v687_v50 = vsel %vm3509_vm9, %v2479_v4, 0.0  ;;  %v617_v40 = vsel %vm601_vm4, %v2517_v21, 0.0  ;;  %v701_v56 = vadd.f32 %v700_v19, %v686_v29  ;;  %vm3510_vm7 = vcmp.eq.s32.totalorder %v1949_v31, %v2101_v43 }
 0x234   :  { %v759_v13 = vsel %vm3510_vm7, %v2427_v61, 0.0  ;;  %v773_v36 = vadd.f32 %v772_v52, %v758_v51  ;;  %vm820_vm0 = vcmp.eq.s32.totalorder %v1987_v39, %v2103_v44  ;;  %v558_v63 = vadd.f32 %v557_v53, %v543_v32 }
 0x235   :  { %v631_v25 = vadd.f32 %v630_v55, %v616_v54  ;;  %v760_v59 = vsel %vm744_vm15, %v2479_v4, 0.0  ;;  %v831_v41 = vsel %vm815_vm6, %v2439_v15, 0.0  ;;  %vm890_vm4 = vcmp.eq.s32.totalorder %v1949_v31, %v2105_v45 }
 0x236   :  { %vm3511_vm9 = vcmp.eq.s32.totalorder %v1965_v35, %v2099_v42  ;;  %v702_v29 = vadd.f32 %v701_v56, %v687_v50  ;;  %v774_v32 = vadd.f32 %v773_v36, %v759_v13  ;;  %v845_v60 = vadd.f32 %v844_v20, %v830_v9 }
 0x237   :  { %v688_v51 = vsel %vm3511_vm9, %v2467_v3, 0.0  ;;  %vm891_vm7 = vcmp.eq.s32.totalorder %v1962_v34, %v2105_v45  ;;  %v559_v54 = vadd.f32 %v558_v63, %v544_v1  ;;  %v632_v7 = vadd.f32 %v631_v25, %v617_v40 }
 0x238   :  { %v690_v19 = vsel %vm674_vm12, %v2517_v21, 0.0  ;;  %v761_v52 = vsel %vm745_vm5, %v2467_v3, 0.0  ;;  %vm892_vm15 = vcmp.eq.s32.totalorder %v1965_v35, %v2105_v45  ;;  %v703_v50 = vadd.f32 %v702_v29, %v688_v51 }
 0x239   :  { %v762_v20 = vsel %vm746_vm10, %v2535_v2, 0.0  ;;  %v775_v9 = vadd.f32 %v774_v32, %v760_v59  ;;  %v846_v1 = vadd.f32 %v845_v60, %v831_v41  ;;  %v560_v53 = vrot.slane %v559_v54, 4 }
 0x23a   :  { %v633_v55 = vrot.slane %v632_v7, 4  ;;  %v832_v42 = vsel %vm816_vm1, %v2427_v61, 0.0  ;;  %v833_v40 = vsel %vm817_vm14, %v2479_v4, 0.0  ;;  %vm961_vm12 = vcmp.eq.s32.totalorder %v1924_v26, %v2107_v46 }
 0x23b   :  { %v704_v56 = vadd.f32 %v703_v50, %v689_v12  ;;  %v763_v13 = vsel %vm747_vm11, %v2517_v21, 0.0  ;;  %v776_v36 = vadd.f32 %v775_v9, %v761_v52  ;;  %v847_v63 = vadd.f32 %v846_v1, %v832_v42 }
 0x23c   :  { %vm893_vm5 = vcmp.eq.s32.totalorder %v1984_v38, %v2105_v45  ;;  %vm962_vm6 = vcmp.eq.s32.totalorder %v1927_v27, %v2107_v46  ;;  %v561_v25 = vadd.f32 %v560_v53, %v559_v54  ;;  %v634_v59 = vadd.f32 %v633_v55, %v632_v7 }
 0x23d   :  { %v834_v12 = vsel %vm818_vm3, %v2467_v3, 0.0  ;;  %v917_v41 = vadd.f32 %v2601_v11, %v2675_v28  ;;  %v705_v43 = vadd.f32 %v704_v56, %v690_v19  ;;  %v777_v51 = vadd.f32 %v776_v36, %v762_v20 }
 0x23e   :  { %v835_v29 = vsel %vm819_vm8, %v2535_v2, 0.0  ;;  %v848_v32 = vadd.f32 %v847_v63, %v833_v40  ;;  %vm963_vm10 = vcmp.eq.s32.totalorder %v1946_v30, %v2107_v46  ;;  %v562_v60 = vrot.slane %v561_v25, 2 }
 0x23f   :  { %v635_v54 = vrot.slane %v634_v59, 2  ;;  %v904_v7 = vsel %vm888_vm2, %v2349_v18, 0.0  ;;  %v918_v11 = vadd.f32 %v917_v41, %v2727_v33  ;;  %v706_v28 = vrot.slane %v705_v43, 4 }
 0x240   :  { %v778_v19 = vadd.f32 %v777_v51, %v763_v13  ;;  %v849_v52 = vadd.f32 %v848_v32, %v834_v12  ;;  %v905_v50 = vsel %vm889_vm13, %v2439_v15, 0.0  ;;  %v563_v20 = vadd.f32 %v562_v60, %v561_v25 }
 0x241   :  { %v636_v9 = vadd.f32 %v635_v54, %v634_v59  ;;  %v836_v1 = vsel %vm820_vm0, %v2517_v21, 0.0  ;;  %vm894_vm1 = vcmp.eq.s32.totalorder %v1987_v39, %v2105_v45  ;;  %v919_v53 = vadd.f32 %v918_v11, %v904_v7 }
 0x242   :  { %v707_v33 = vadd.f32 %v706_v28, %v705_v43  ;;  %v779_v55 = vrot.slane %v778_v19, 4  ;;  %v850_v42 = vadd.f32 %v849_v52, %v835_v29  ;;  %v906_v40 = vsel %vm890_vm4, %v2427_v61, 0.0 }
 0x243   :  { %vm964_vm14 = vcmp.eq.s32.totalorder %v1949_v31, %v2107_v46  ;;  %v564_v56 = vrot.slane %v563_v20, 1  ;;  %v637_v13 = vrot.slane %v636_v9, 1  ;;  %v907_v44 = vsel %vm891_vm7, %v2479_v4, 0.0 }
 0x244   :  { %v920_v36 = vadd.f32 %v919_v53, %v905_v50  ;;  %vm965_vm11 = vcmp.eq.s32.totalorder %v1962_v34, %v2107_v46  ;;  %v708_v63 = vrot.slane %v707_v33, 2  ;;  %v780_v25 = vadd.f32 %v779_v55, %v778_v19 }
 0x245   :  { %v851_v59 = vadd.f32 %v850_v42, %v836_v1  ;;  %v908_v12 = vsel %vm892_vm15, %v2467_v3, 0.0  ;;  %vm1032_vm3 = vcmp.eq.s32.totalorder %v1880_v17, %v2109_v47  ;;  %vm1033_vm8 = vcmp.eq.s32.totalorder %v1910_v22, %v2109_v47 }
 0x246   :  { %v2884_v41 = vadd.f32 %v564_v56, %v563_v20  ;;  %v2886_v43 = vadd.f32 %v637_v13, %v636_v9  ;;  %v921_v51 = vadd.f32 %v920_v36, %v906_v40  ;;  %v991_v29 = vadd.f32 %v2603_v0, %v2681_v10 }
 0x247   :  { %v709_v32 = vadd.f32 %v708_v63, %v707_v33  ;;  %v781_v60 = vrot.slane %v780_v25, 2  ;;  %v852_v54 = vrot.slane %v851_v59, 4  ;;  %vm966_vm2 = vcmp.eq.s32.totalorder %v1965_v35, %v2107_v46 }
 0x248   :  { %v977_v7 = vsel %vm961_vm12, %v2367_v24, 0.0  ;;  %v567_v11 = vand.u32 2147483647, %v2884_v41  ;;  %v640_v28 = vand.u32 2147483647, %v2886_v43  ;;  %v909_v0 = vsel %vm893_vm5, %v2535_v2, 0.0 }
 0x249   :  { %vm967_vm13 = vcmp.eq.s32.totalorder %v1984_v38, %v2107_v46  ;;  %v978_v10 = vsel %vm962_vm6, %v2349_v18, 0.0  ;;  %v710_v19 = vrot.slane %v709_v32, 1  ;;  %v782_v52 = vadd.f32 %v781_v60, %v780_v25 }
 0x24a   :  { %v853_v50 = vadd.f32 %v852_v54, %v851_v59  ;;  %v922_v20 = vadd.f32 %v921_v51, %v907_v44  ;;  %v568_v9 = vsub.f32 0.0, %v567_v11  ;;  %v641_v1 = vsub.f32 0.0, %v640_v28 }
 0x24b   :  { %v979_v53 = vsel %vm963_vm10, %v2439_v15, 0.0  ;;  %v992_v33 = vadd.f32 %v991_v29, %v977_v7  ;;  %vm1034_vm0 = vcmp.eq.s32.totalorder %v1913_v23, %v2109_v47  ;;  %v2914_v55 = vadd.f32 %v710_v19, %v709_v32 }
 0x24c   :  { %v783_v42 = vrot.slane %v782_v52, 1  ;;  %v854_v40 = vrot.slane %v853_v50, 2  ;;  %v923_v56 = vadd.f32 %v922_v20, %v908_v12  ;;  %vm1178_vm4 = vcmp.eq.s32.totalorder %v1874_v14, %v2113_v49 }
 0x24d   :  { %v569_v13 = vmul.f32 1.442695, %v568_v9  ;;  %v642_v44 = vmul.f32 1.442695, %v641_v1  ;;  %vm968_vm9 = vcmp.eq.s32.totalorder %v1987_v39, %v2107_v46  ;;  %v993_v36 = vadd.f32 %v992_v33, %v978_v10 }
 0x24e   :  { %vm1035_vm7 = vcmp.eq.s32.totalorder %v1924_v26, %v2109_v47  ;;  %vm1106_vm15 = vcmp.eq.s32.totalorder %v1880_v17, %v2111_v48  ;;  %v713_v63 = vand.u32 2147483647, %v2914_v55  ;;  %v2925_v25 = vadd.f32 %v783_v42, %v782_v52 }
 0x24f   :  { %v855_v59 = vadd.f32 %v854_v40, %v853_v50  ;;  %v910_v12 = vsel %vm894_vm1, %v2517_v21, 0.0  ;;  %vm1179_vm12 = vcmp.eq.s32.totalorder %v1877_v16, %v2113_v49  ;;  %1732 = vpow2.f32 %v569_v13 }
 0x250   :  { %v924_v51 = vadd.f32 %v923_v56, %v909_v0  ;;  %v980_v29 = vsel %vm964_vm14, %v2427_v61, 0.0  ;;  %v994_v32 = vadd.f32 %v993_v36, %v979_v53  ;;  %1734 = vpow2.f32 %v642_v44 }
 0x251   :  { %v714_v60 = vsub.f32 0.0, %v713_v63  ;;  %v786_v54 = vand.u32 2147483647, %v2925_v25  ;;  %v981_v45 = vsel %vm965_vm11, %v2479_v4, 0.0  ;;  %vm1036_vm5 = vcmp.eq.s32.totalorder %v1927_v27, %v2109_v47 }
 0x252   :  { %v856_v7 = vrot.slane %v855_v59, 1  ;;  %v925_v11 = vadd.f32 %v924_v51, %v910_v12  ;;  %v995_v28 = vadd.f32 %v994_v32, %v980_v29  ;;  %vm1037_vm6 = vcmp.eq.s32.totalorder %v1946_v30, %v2109_v47 }
 0x253   :  { %v1048_v0 = vsel %vm1032_vm3, %v2267_v37, 0.0  ;;  %v1049_v10 = vsel %vm1033_vm8, %v2321_v62, 0.0  ;;  %v715_v19 = vmul.f32 1.442695, %v714_v60  ;;  %v787_v52 = vsub.f32 0.0, %v786_v54 }
 0x254   :  { %vm1038_vm10 = vcmp.eq.s32.totalorder %v1949_v31, %v2109_v47  ;;  %v2956_v50 = vadd.f32 %v856_v7, %v855_v59  ;;  %v926_v20 = vrot.slane %v925_v11, 4  ;;  %v982_v9 = vsel %vm966_vm2, %v2467_v3, 0.0 }
 0x255   :  { %v996_v1 = vadd.f32 %v995_v28, %v981_v45  ;;  %1736 = vpow2.f32 %v715_v19  ;;  %v788_v53 = vmul.f32 1.442695, %v787_v52  ;;  %v983_v33 = vsel %vm967_vm13, %v2535_v2, 0.0 }
 0x256   :  { %vm1040_vm1 = vcmp.eq.s32.totalorder %v1965_v35, %v2109_v47  ;;  %v1063_v42 = vadd.f32 %v2497_v6, %v1048_v0  ;;  %v3435_v40 = vsub.f32 0.0, %v2956_v50  ;;  %v927_v56 = vadd.f32 %v926_v20, %v925_v11 }
 0x257   :  { %v997_v13 = vadd.f32 %v996_v1, %v982_v9  ;;  %vm1039_vm14 = vcmp.eq.s32.totalorder %v1962_v34, %v2109_v47  ;;  %1738 = vpow2.f32 %v788_v53  ;;  %vm1041_vm11 = vcmp.eq.s32.totalorder %v1984_v38, %v2109_v47 }
 0x258   :  { %vm1042_vm3 = vcmp.eq.s32.totalorder %v1987_v39, %v2109_v47  ;;  %v1050_v44 = vsel %vm1034_vm0, %v2305_v57, 0.0  ;;  %v1064_v6 = vadd.f32 %v1063_v42, %v1049_v10  ;;  %v860_v36 = vand.u32 2147483647, %v3435_v40 }
 0x259   :  { %v928_v63 = vrot.slane %v927_v56, 2  ;;  %v998_v59 = vadd.f32 %v997_v13, %v983_v33  ;;  %v1051_v12 = vsel %vm1035_vm7, %v2367_v24, 0.0  ;;  %v2990_v51 = vsel %vm1178_vm4, %v2225_v5, 0.0  ;;  %v1733_v60 = vpop.eup %1732 }
 0x25a   :  { %v984_v29 = vsel %vm968_vm9, %v2517_v21, 0.0  ;;  %v1065_v32 = vadd.f32 %v1064_v6, %v1050_v44  ;;  %vm1107_vm8 = vcmp.eq.s32.totalorder %v1910_v22, %v2111_v48  ;;  %vm1108_vm2 = vcmp.eq.s32.totalorder %v1913_v23, %v2111_v48  ;;  %v3006_v46 = vpop.eup %1734 }
 0x25b   :  { %v1122_v54 = vsel %vm1106_vm15, %v2267_v37, 0.0  ;;  %v861_v45 = vsub.f32 0.0, %v860_v36  ;;  %v929_v7 = vadd.f32 %v928_v63, %v927_v56  ;;  %v999_v11 = vadd.f32 %v998_v59, %v984_v29 }
 0x25c   :  { %vm1109_vm13 = vcmp.eq.s32.totalorder %v1924_v26, %v2111_v48  ;;  %v3012_v28 = vsel %vm1179_vm12, %v2277_v8, 0.0  ;;  %v571_v10 = vadd.f32 1.0, %v1733_v60  ;;  %v1066_v19 = vadd.f32 %v1065_v32, %v1051_v12 }
 0x25d   :  { %v644_v20 = vadd.f32 1.0, %v3006_v46  ;;  %v862_v9 = vmul.f32 1.442695, %v861_v45  ;;  %v1052_v1 = vsel %vm1036_vm5, %v2349_v18, 0.0  ;;  %v930_v33 = vrot.slane %v929_v7, 1 }
 0x25e   :  { %1740 = vlog2.f32 %v571_v10  ;;  %v1053_v42 = vsel %vm1037_vm6, %v2439_v15, 0.0  ;;  %v1000_v56 = vrot.slane %v999_v11, 4  ;;  %v1054_v13 = vsel %vm1038_vm10, %v2427_v61, 0.0 }
 0x25f   :  { %1742 = vlog2.f32 %v644_v20  ;;  %v1055_v44 = vsel %vm1039_vm14, %v2479_v4, 0.0  ;;  %v3034_v6 = vpop.eup %1736  ;;  %v574_v36 = vmul.f32 -0.5, %v1733_v60  ;;  %v3036_v63 = vadd.f32 %v930_v33, %v929_v7 }
 0x260   :  { %1744 = vpow2.f32 %v862_v9  ;;  %v1067_v59 = vadd.f32 %v1066_v19, %v1052_v1  ;;  %v577_v12 = vand.u32 2147483647, %v1733_v60  ;;  %v717_v29 = vadd.f32 1.0, %v3034_v6 }
 0x261   :  { %3512 = vst [vmem:[#allocation18_spill] sm:$0xff] %v3036_v63  ;;  %v1056_v32 = vsel %vm1040_vm1, %v2467_v3, 0.0  ;;  %v1057_v45 = vsel %vm1041_vm11, %v2535_v2, 0.0  ;;  %v3047_v10 = vpop.eup %1738  ;;  %v647_v20 = vmul.f32 -0.5, %v3006_v46  ;;  %v3436_v7 = vsub.f32 0.0, %v3036_v63 }
 0x262   :  { %v1001_v19 = vadd.f32 %v1000_v56, %v999_v11  ;;  %v1068_v9 = vadd.f32 %v1067_v59, %v1053_v42  ;;  %1746 = vlog2.f32 %v717_v29  ;;  %v790_v1 = vadd.f32 1.0, %v3047_v10 }
 0x263   :  { %v1058_v33 = vsel %vm1042_vm3, %v2517_v21, 0.0  ;;  %v1123_v40 = vsel %vm1107_vm8, %v2321_v62, 0.0  ;;  %v575_v53 = vadd.f32 1.0, %v574_v36  ;;  %v650_v52 = vand.u32 2147483647, %v3006_v46 }
 0x264   :  { %v720_v0 = vmul.f32 -0.5, %v3034_v6  ;;  %v934_v11 = vand.u32 2147483647, %v3436_v7  ;;  %vm1110_vm0 = vcmp.eq.s32.totalorder %v1927_v27, %v2111_v48  ;;  %1748 = vlog2.f32 %v790_v1 }
 0x265   :  { %v1002_v42 = vrot.slane %v1001_v19, 2  ;;  %v1069_v47 = vadd.f32 %v1068_v9, %v1054_v13  ;;  %v1124_v56 = vsel %vm1108_vm2, %v2305_v57, 0.0  ;;  %vm3070_vm4 = vcmp.lt.f32.partialorder %v577_v12, 0.0004427343 }
 0x266   :  { %v648_v59 = vadd.f32 1.0, %v647_v20  ;;  %v935_v29 = vsub.f32 0.0, %v934_v11  ;;  %v1125_v7 = vsel %vm1109_vm13, %v2367_v24, 0.0  ;;  %v793_v1 = vmul.f32 -0.5, %v3047_v10 }
 0x267   :  { %v1003_v8 = vadd.f32 %v1002_v42, %v1001_v19  ;;  %v1070_v13 = vadd.f32 %v1069_v47, %v1055_v44  ;;  %vm1111_vm9 = vcmp.eq.s32.totalorder %v1946_v30, %v2111_v48  ;;  %v1137_v9 = vadd.f32 %v2513_v58, %v1122_v54 }
 0x268   :  { %v1741_v12 = vpop.eup %1740  ;;  %v576_v21 = vmul.f32 %v1733_v60, %v575_v53  ;;  %vm3082_vm7 = vcmp.lt.f32.partialorder %v650_v52, 0.0004427343  ;;  %v721_v20 = vadd.f32 1.0, %v720_v0  ;;  %v936_v11 = vmul.f32 1.442695, %v935_v29 }
 0x269   :  { %v1743_v57 = vpop.eup %1742  ;;  %v573_v2 = vmul.f32 0.6931472, %v1741_v12  ;;  %v1004_v24 = vrot.slane %v1003_v8, 1  ;;  %v1071_v3 = vadd.f32 %v1070_v13, %v1056_v32  ;;  %vm1112_vm15 = vcmp.eq.s32.totalorder %v1949_v31, %v2111_v48 }
 0x26a   :  { %vm1113_vm12 = vcmp.eq.s32.totalorder %v1962_v34, %v2111_v48  ;;  %v1138_v44 = vadd.f32 %v1137_v9, %v1123_v40  ;;  %v3090_v58 = vpop.eup %1744  ;;  %v646_v60 = vmul.f32 0.6931472, %v1743_v57  ;;  %v649_v54 = vmul.f32 %v3006_v46, %v648_v59 }
 0x26b   :  { %v723_v52 = vand.u32 2147483647, %v3034_v6  ;;  %1750 = vpow2.f32 %v936_v11  ;;  %vm1180_vm5 = vcmp.eq.s32.totalorder %v1880_v17, %v2113_v49  ;;  %v579_v0 = vsel %vm3070_vm4, %v576_v21, %v573_v2 }
 0x26c   :  { %v794_v53 = vadd.f32 1.0, %v793_v1  ;;  %v796_v32 = vand.u32 2147483647, %v3047_v10  ;;  %v864_v19 = vadd.f32 1.0, %v3090_v58  ;;  %v3517_v40 = vmin.f32 %v2884_v41, 0.0  ;;  %v1747_v59 = vpop.eup %1746  ;;  %v3519_v41 = vld [vmem:[#allocation6_spill] sm:$0xff] }
 0x26d   :  { %v652_v57 = vsel %vm3082_vm7, %v649_v54, %v646_v60  ;;  %v3104_v46 = vadd.f32 %v1004_v24, %v1003_v8  ;;  %v1072_v47 = vadd.f32 %v1071_v3, %v1057_v45  ;;  %vm1181_vm6 = vcmp.eq.s32.totalorder %v1910_v22, %v2113_v49 }
 0x26e   :  { %v580_v42 = vsub.f32 %v3517_v40, %v579_v0  ;;  %v3518_v21 = vmin.f32 %v2886_v43, 0.0  ;;  %v722_v36 = vmul.f32 %v3034_v6, %v721_v20  ;;  %1752 = vlog2.f32 %v864_v19  ;;  %v1749_v45 = vpop.eup %1748 }
 0x26f   :  { %v867_v29 = vmul.f32 -0.5, %v3090_v58  ;;  %vm1252_vm10 = vcmp.eq.s32.totalorder %v1874_v14, %v3519_v41  ;;  %v719_v63 = vmul.f32 0.6931472, %v1747_v59  ;;  %v1006_v8 = vsub.f32 0.0, %v3104_v46 }
 0x270   :  { %v653_v2 = vsub.f32 %v3518_v21, %v652_v57  ;;  %v1073_v24 = vadd.f32 %v1072_v47, %v1058_v33  ;;  %vm1114_vm1 = vcmp.eq.s32.totalorder %v1965_v35, %v2111_v48  ;;  %v1139_v3 = vadd.f32 %v1138_v44, %v1124_v56 }
 0x271   :  { %vm724_vm14 = vcmp.lt.f32.partialorder %v723_v52, 0.0004427343  ;;  %v785_v43 = vmin.f32 %v2925_v25, 0.0  ;;  %v1126_v6 = vsel %vm1110_vm0, %v2349_v18, 0.0  ;;  %v792_v9 = vmul.f32 0.6931472, %v1749_v45 }
 0x272   :  { %v654_v1 = vadd.f32 %v653_v2, %v580_v42  ;;  %v725_v13 = vsel %vm724_vm14, %v722_v36, %v719_v63  ;;  %v795_v12 = vmul.f32 %v3047_v10, %v794_v53  ;;  %v1008_v33 = vand.u32 2147483647, %v1006_v8  ;;  %v3521_v42 = vld [vmem:[#allocation13_spill] sm:$0xff] }
 0x273   :  { %vm1115_vm11 = vcmp.eq.s32.totalorder %v1984_v38, %v2111_v48  ;;  %vm1182_vm3 = vcmp.eq.s32.totalorder %v1913_v23, %v2113_v49  ;;  %vm1183_vm8 = vcmp.eq.s32.totalorder %v1924_v26, %v2113_v49  ;;  %v3520_v25 = vmin.f32 %v2914_v55, 0.0 }
 0x274   :  { %vm797_vm2 = vcmp.lt.f32.partialorder %v796_v32, 0.0004427343  ;;  %v1074_v20 = vrot.slane %v1073_v24, 4  ;;  %v1140_v11 = vadd.f32 %v1139_v3, %v1125_v7  ;;  %v868_v10 = vadd.f32 1.0, %v867_v29 }
 0x275   :  { %v726_v56 = vsub.f32 %v3520_v25, %v725_v13  ;;  %v798_v44 = vsel %vm797_vm2, %v795_v12, %v792_v9  ;;  %v1009_v60 = vsub.f32 0.0, %v1008_v33  ;;  %vm1116_vm13 = vcmp.eq.s32.totalorder %v1987_v39, %v2111_v48  ;;  %v3143_v7 = vpop.eup %1750  ;;  %v3523_v12 = vld [vmem:[#allocation15_spill] sm:$0xff] }
 0x276   :  { %v1127_v54 = vsel %vm1111_vm9, %v2439_v15, 0.0  ;;  %vm1184_vm0 = vcmp.eq.s32.totalorder %v1927_v27, %v2113_v49  ;;  %v799_v55 = vsub.f32 %v785_v43, %v798_v44  ;;  %v1075_v0 = vadd.f32 %v1074_v20, %v1073_v24 }
 0x277   :  { %v727_v52 = vadd.f32 %v726_v56, %v654_v1  ;;  %v1141_v53 = vadd.f32 %v1140_v11, %v1126_v6  ;;  %vm1253_vm4 = vcmp.eq.s32.totalorder %v1877_v16, %v3519_v41  ;;  %v1010_v32 = vmul.f32 1.442695, %v1009_v60  ;;  %v3525_v60 = vld [vmem:[#allocation11_spill] sm:$0xff] }
 0x278   :  { %v1128_v19 = vsel %vm1112_vm15, %v2427_v61, 0.0  ;;  %v1129_v40 = vsel %vm1113_vm12, %v2479_v4, 0.0  ;;  %vm1185_vm9 = vcmp.eq.s32.totalorder %v1946_v30, %v2113_v49  ;;  %vm1186_vm7 = vcmp.eq.s32.totalorder %v1949_v31, %v2113_v49 }
 0x279   :  { %v1209_v57 = vadd.f32 %v3521_v42, %v2990_v51  ;;  %v800_v47 = vadd.f32 %v799_v55, %v727_v52  ;;  %v870_v59 = vand.u32 2147483647, %v3090_v58  ;;  %v938_v21 = vadd.f32 1.0, %v3143_v7  ;;  %v1753_v51 = vpop.eup %1752  ;;  %v3526_v52 = vld [vmem:[#allocation12_spill] sm:$0xff]  ;;  %v3527_v42 = vld [vmem:[#allocation18_spill] sm:$0xff] }
 0x27a   :  { %v1196_v2 = vsel %vm1180_vm5, %v2267_v37, 0.0  ;;  %1754 = vpow2.f32 %v1010_v32  ;;  %v1076_v36 = vrot.slane %v1075_v0, 2  ;;  %v1142_v29 = vadd.f32 %v1141_v53, %v1127_v54 }
 0x27b   :  { %v1210_v63 = vadd.f32 %v1209_v57, %v3012_v28  ;;  %vm1254_vm15 = vcmp.eq.s32.totalorder %v1880_v17, %v3519_v41  ;;  %vm1255_vm12 = vcmp.eq.s32.totalorder %v1910_v22, %v3519_v41  ;;  %v869_v24 = vmul.f32 %v3090_v58, %v868_v10  ;;  %v3524_v10 = vld [vmem:[#allocation17_spill] sm:$0xff] }
 0x27c   :  { %1756 = vlog2.f32 %v938_v21  ;;  %v941_v3 = vmul.f32 -0.5, %v3143_v7  ;;  %v1197_v45 = vsel %vm1181_vm6, %v2321_v62, 0.0  ;;  %v866_v1 = vmul.f32 0.6931472, %v1753_v51  ;;  %v3529_v21 = vld [vmem:[#allocation16_spill] sm:$0xff] }
 0x27d   :  { %v1077_v43 = vadd.f32 %v1076_v36, %v1075_v0  ;;  %v1143_v28 = vadd.f32 %v1142_v29, %v1128_v19  ;;  %vm1187_vm5 = vcmp.eq.s32.totalorder %v1962_v34, %v2113_v49  ;;  %v1211_v6 = vadd.f32 %v1210_v63, %v1196_v2  ;;  %v3530_v29 = vld [vmem:[#allocation7_spill] sm:$0xff]  ;;  %v3531_v63 = vld [vmem:[#allocation5_spill] sm:$0xff] }
 0x27e   :  { %v1268_v58 = vsel %vm1252_vm10, %v2225_v5, 0.0  ;;  %v3522_v13 = vsub.f32 0.0, %v2956_v50  ;;  %vm871_vm14 = vcmp.lt.f32.partialorder %v870_v59, 0.0004427343  ;;  %v1130_v33 = vsel %vm1114_vm1, %v3523_v12, 0.0 }
 0x27f   :  { %v872_v25 = vsel %vm871_vm14, %v869_v24, %v866_v1  ;;  %v1078_v56 = vrot.slane %v1077_v43, 1  ;;  %v1144_v20 = vadd.f32 %v1143_v28, %v1129_v40  ;;  %v1212_v11 = vadd.f32 %v1211_v6, %v1197_v45  ;;  %v3533_v28 = vld [vmem:[#allocation14_spill] sm:$0xff] }
 0x280   :  { %v859_v9 = vmin.f32 %v3522_v13, 0.0  ;;  %vm1256_vm6 = vcmp.eq.s32.totalorder %v1913_v23, %v3519_v41  ;;  %v1131_v50 = vsel %vm1115_vm11, %v3524_v10, 0.0  ;;  %v1198_v54 = vsel %vm1182_vm3, %v3525_v60, 0.0 }
 0x281   :  { %v1199_v55 = vsel %vm1183_vm8, %v3526_v52, 0.0  ;;  %vm1257_vm10 = vcmp.eq.s32.totalorder %v1924_v26, %v3519_v41  ;;  %v942_v0 = vadd.f32 1.0, %v941_v3  ;;  %v3204_v53 = vadd.f32 %v1078_v56, %v1077_v43  ;;  %v3532_v3 = vld [vmem:[#allocation10_spill] sm:$0xff] }
 0x282   :  { %v873_v44 = vsub.f32 %v859_v9, %v872_v25  ;;  %v1145_v32 = vadd.f32 %v1144_v20, %v1130_v33  ;;  %vm1188_vm1 = vcmp.eq.s32.totalorder %v1965_v35, %v2113_v49  ;;  %vm1189_vm11 = vcmp.eq.s32.totalorder %v1984_v38, %v2113_v49 }
 0x283   :  { %v1213_v19 = vadd.f32 %v1212_v11, %v1198_v54  ;;  %v3528_v57 = vsub.f32 0.0, %v3527_v42  ;;  %v1132_v2 = vsel %vm1116_vm13, %v3529_v21, 0.0  ;;  %v1200_v36 = vsel %vm1184_vm0, %v2349_v18, 0.0 }
 0x284   :  { %v874_v40 = vadd.f32 %v873_v44, %v800_v47  ;;  %vm1325_vm3 = vcmp.eq.s32.totalorder %v3531_v63, %v3530_v29  ;;  %v1080_v51 = vsub.f32 0.0, %v3204_v53  ;;  %v1146_v24 = vadd.f32 %v1145_v32, %v1131_v50  ;;  %v3241_v13 = vpop.eup %1754 }
 0x285   :  { %v933_v59 = vmin.f32 %v3528_v57, 0.0  ;;  %v1214_v47 = vadd.f32 %v1213_v19, %v1199_v55  ;;  %v1269_v45 = vsel %vm1253_vm4, %v3532_v3, 0.0  ;;  %v944_v48 = vand.u32 2147483647, %v3143_v7 }
 0x286   :  { %v1201_v1 = vsel %vm1185_vm9, %v2439_v15, 0.0  ;;  %v1202_v43 = vsel %vm1186_vm7, %v2427_v61, 0.0  ;;  %vm1258_vm8 = vcmp.eq.s32.totalorder %v1927_v27, %v3519_v41  ;;  %vm1259_vm2 = vcmp.eq.s32.totalorder %v1946_v30, %v3519_v41  ;;  %v1757_v20 = vpop.eup %1756 }
 0x287   :  { %v1283_v6 = vadd.f32 %v3533_v28, %v1268_v58  ;;  %v943_v9 = vmul.f32 %v3143_v7, %v942_v0  ;;  %v1082_v33 = vand.u32 2147483647, %v1080_v51  ;;  %v1147_v25 = vadd.f32 %v1146_v24, %v1132_v2 }
 0x288   :  { %vm1190_vm13 = vcmp.eq.s32.totalorder %v1987_v39, %v2113_v49  ;;  %v1215_v56 = vadd.f32 %v1214_v47, %v1200_v36  ;;  %v1012_v11 = vadd.f32 1.0, %v3241_v13  ;;  %vm1260_vm0 = vcmp.eq.s32.totalorder %v1949_v31, %v3519_v41 }
 0x289   :  { %v1270_v58 = vsel %vm1254_vm15, %v2267_v37, 0.0  ;;  %v1271_v7 = vsel %vm1255_vm12, %v2321_v62, 0.0  ;;  %v1284_v44 = vadd.f32 %v1283_v6, %v1269_v45  ;;  %v940_v50 = vmul.f32 0.6931472, %v1757_v20 }
 0x28a   :  { %v1083_v54 = vsub.f32 0.0, %v1082_v33  ;;  %v1148_v55 = vrot.slane %v1147_v25, 4  ;;  %v1216_v0 = vadd.f32 %v1215_v56, %v1201_v1  ;;  %vm945_vm4 = vcmp.lt.f32.partialorder %v944_v48, 0.0004427343 }
 0x28b   :  { %1758 = vlog2.f32 %v1012_v11  ;;  %v1203_v32 = vsel %vm1187_vm5, %v2479_v4, 0.0  ;;  %v1285_v19 = vadd.f32 %v1284_v44, %v1270_v58  ;;  %vm1326_vm9 = vcmp.eq.s32.totalorder %v1874_v14, %v3530_v29 }
 0x28c   :  { %v946_v42 = vsel %vm945_vm4, %v943_v9, %v940_v50  ;;  %v1084_v57 = vmul.f32 1.442695, %v1083_v54  ;;  %v1149_v2 = vadd.f32 %v1148_v55, %v1147_v25  ;;  %v1217_v36 = vadd.f32 %v1216_v0, %v1202_v43 }
 0x28d   :  { %vm1327_vm7 = vcmp.eq.s32.totalorder %v1877_v16, %v3530_v29  ;;  %v947_v24 = vsub.f32 %v933_v59, %v946_v42  ;;  %v1015_v47 = vmul.f32 -0.5, %v3241_v13  ;;  %v1272_v45 = vsel %vm1256_vm6, %v3525_v60, 0.0 }
 0x28e   :  { %v1286_v48 = vadd.f32 %v1285_v19, %v1271_v7  ;;  %1760 = vpow2.f32 %v1084_v57  ;;  %v1150_v1 = vrot.slane %v1149_v2, 2  ;;  %v1218_v28 = vadd.f32 %v1217_v36, %v1203_v32  ;;  %v3535_v36 = vld [vmem:[#allocation9_spill] sm:$0xff] }
 0x28f   :  { %v1273_v43 = vsel %vm1257_vm10, %v3526_v52, 0.0  ;;  %v948_v6 = vadd.f32 %v947_v24, %v874_v40  ;;  %v1204_v59 = vsel %vm1188_vm1, %v3523_v12, 0.0  ;;  %v1205_v9 = vsel %vm1189_vm11, %v3524_v10, 0.0  ;;  %v3534_v40 = vld [vmem:[#allocation8_spill] sm:$0xff] }
 0x290   :  { %v1287_v33 = vadd.f32 %v1286_v48, %v1272_v45  ;;  %v1151_v25 = vadd.f32 %v1150_v1, %v1149_v2  ;;  %v1219_v56 = vadd.f32 %v1218_v28, %v1204_v59  ;;  %vm1261_vm15 = vcmp.eq.s32.totalorder %v1962_v34, %v3519_v41 }
 0x291   :  { %vm1262_vm12 = vcmp.eq.s32.totalorder %v1965_v35, %v3519_v41  ;;  %vm1328_vm5 = vcmp.eq.s32.totalorder %v1880_v17, %v3530_v29  ;;  %v1341_v20 = vsel %vm1325_vm3, %v3534_v40, 0.0  ;;  %v1016_v11 = vadd.f32 1.0, %v1015_v47 }
 0x292   :  { %v1288_v58 = vadd.f32 %v1287_v33, %v1273_v43  ;;  %vm1329_vm14 = vcmp.eq.s32.totalorder %v1910_v22, %v3530_v29  ;;  %v1152_v7 = vrot.slane %v1151_v25, 1  ;;  %v1220_v44 = vadd.f32 %v1219_v56, %v1205_v9 }
 0x293   :  { %v1274_v50 = vsel %vm1258_vm8, %v2349_v18, 0.0  ;;  %v1275_v54 = vsel %vm1259_vm2, %v2439_v15, 0.0  ;;  %v1018_v63 = vand.u32 2147483647, %v3241_v13  ;;  %v1206_v55 = vsel %vm1190_vm13, %v3529_v21, 0.0 }
 0x294   :  { %vm1263_vm6 = vcmp.eq.s32.totalorder %v1984_v38, %v3519_v41  ;;  %v1289_v0 = vadd.f32 %v1288_v58, %v1274_v50  ;;  %v1007_v32 = vmin.f32 %v1006_v8, 0.0  ;;  %v3313_v19 = vadd.f32 %v1152_v7, %v1151_v25 }
 0x295   :  { %v1221_v42 = vadd.f32 %v1220_v44, %v1206_v55  ;;  %vm1264_vm10 = vcmp.eq.s32.totalorder %v1987_v39, %v3519_v41  ;;  %v1276_v57 = vsel %vm1260_vm0, %v2427_v61, 0.0  ;;  %vm1330_vm1 = vcmp.eq.s32.totalorder %v1913_v23, %v3530_v29  ;;  %v1759_v49 = vpop.eup %1758 }
 0x296   :  { %v1017_v2 = vmul.f32 %v3241_v13, %v1016_v11  ;;  %v1277_v46 = vsel %vm1261_vm15, %v2479_v4, 0.0  ;;  %v1290_v8 = vadd.f32 %v1289_v0, %v1275_v54  ;;  %v1356_v24 = vadd.f32 %v3535_v36, %v1341_v20 }
 0x297   :  { %v1014_v47 = vmul.f32 0.6931472, %v1759_v49  ;;  %v1154_v45 = vsub.f32 0.0, %v3313_v19  ;;  %v1222_v48 = vrot.slane %v1221_v42, 4  ;;  %v1342_v1 = vsel %vm1326_vm9, %v2225_v5, 0.0 }
 0x298   :  { %vm1019_vm11 = vcmp.lt.f32.partialorder %v1018_v63, 0.0004427343  ;;  %v1291_v28 = vadd.f32 %v1290_v8, %v1276_v57  ;;  %v1343_v13 = vsel %vm1327_vm7, %v3532_v3, 0.0  ;;  %v1357_v43 = vadd.f32 %v1356_v24, %v1342_v1  ;;  %v1761_v59 = vpop.eup %1760 }
 0x299   :  { %v1020_v9 = vsel %vm1019_vm11, %v1017_v2, %v1014_v47  ;;  %v1156_v33 = vand.u32 2147483647, %v1154_v45  ;;  %v1223_v25 = vadd.f32 %v1222_v48, %v1221_v42  ;;  %vm1331_vm3 = vcmp.eq.s32.totalorder %v1924_v26, %v3530_v29 }
 0x29a   :  { %v1021_v56 = vsub.f32 %v1007_v32, %v1020_v9  ;;  %v1086_v14 = vadd.f32 1.0, %v1761_v59  ;;  %v1278_v5 = vsel %vm1262_vm12, %v3523_v12, 0.0  ;;  %v1279_v16 = vsel %vm1263_vm6, %v3524_v10, 0.0 }
 0x29b   :  { %v1157_v3 = vsub.f32 0.0, %v1156_v33  ;;  %v1224_v40 = vrot.slane %v1223_v25, 2  ;;  %v1292_v20 = vadd.f32 %v1291_v28, %v1277_v46  ;;  %v1358_v11 = vadd.f32 %v1357_v43, %v1343_v13 }
 0x29c   :  { %v1022_v58 = vadd.f32 %v1021_v56, %v948_v6  ;;  %1762 = vlog2.f32 %v1086_v14  ;;  %v1344_v7 = vsel %vm1328_vm5, %v2267_v37, 0.0  ;;  %v1345_v44 = vsel %vm1329_vm14, %v2321_v62, 0.0 }
 0x29d   :  { %v1158_v50 = vmul.f32 1.442695, %v1157_v3  ;;  %v1225_v54 = vadd.f32 %v1224_v40, %v1223_v25  ;;  %v1293_v63 = vadd.f32 %v1292_v20, %v1278_v5  ;;  %v1359_v55 = vadd.f32 %v1358_v11, %v1344_v7 }
 0x29e   :  { %v1089_v0 = vmul.f32 -0.5, %v1761_v59  ;;  %v1280_v17 = vsel %vm1264_vm10, %v3529_v21, 0.0  ;;  %vm1332_vm8 = vcmp.eq.s32.totalorder %v1927_v27, %v3530_v29  ;;  %v1346_v22 = vsel %vm1330_vm1, %v3525_v60, 0.0 }
 0x29f   :  { %1764 = vpow2.f32 %v1158_v50  ;;  %v1226_v32 = vrot.slane %v1225_v54, 1  ;;  %v1294_v42 = vadd.f32 %v1293_v63, %v1279_v16  ;;  %v1360_v6 = vadd.f32 %v1359_v55, %v1345_v44 }
 0x2a0   :  { %v1347_v37 = vsel %vm1331_vm3, %v3526_v52, 0.0  ;;  %vm1333_vm2 = vcmp.eq.s32.totalorder %v1946_v30, %v3530_v29  ;;  %v1090_v49 = vadd.f32 1.0, %v1089_v0  ;;  %v1092_v8 = vand.u32 2147483647, %v1761_v59 }
 0x2a1   :  { %v3372_v62 = vadd.f32 %v1226_v32, %v1225_v54  ;;  %v1295_v57 = vadd.f32 %v1294_v42, %v1280_v17  ;;  %v1361_v41 = vadd.f32 %v1360_v6, %v1346_v22  ;;  %vm1334_vm13 = vcmp.eq.s32.totalorder %v1949_v31, %v3530_v29 }
 0x2a2   :  { %v1348_v23 = vsel %vm1332_vm8, %v2349_v18, 0.0  ;;  %v1349_v26 = vsel %vm1333_vm2, %v2439_v15, 0.0  ;;  %vm1335_vm0 = vcmp.eq.s32.totalorder %v1962_v34, %v3530_v29  ;;  %v1081_v24 = vmin.f32 %v1080_v51, 0.0 }
 0x2a3   :  { %v1228_v27 = vsub.f32 0.0, %v3372_v62  ;;  %v1296_v2 = vrot.slane %v1295_v57, 4  ;;  %v1362_v46 = vadd.f32 %v1361_v41, %v1347_v37  ;;  %v1091_v47 = vmul.f32 %v1761_v59, %v1090_v49 }
 0x2a4   :  { %vm1336_vm4 = vcmp.eq.s32.totalorder %v1965_v35, %v3530_v29  ;;  %vm1093_vm9 = vcmp.lt.f32.partialorder %v1092_v8, 0.0004427343  ;;  %vm1337_vm7 = vcmp.eq.s32.totalorder %v1984_v38, %v3530_v29  ;;  %v1350_v34 = vsel %vm1334_vm13, %v2427_v61, 0.0 }
 0x2a5   :  { %v1230_v60 = vand.u32 2147483647, %v1228_v27  ;;  %v1297_v52 = vadd.f32 %v1296_v2, %v1295_v57  ;;  %v1363_v30 = vadd.f32 %v1362_v46, %v1348_v23  ;;  %v1351_v53 = vsel %vm1335_vm0, %v2479_v4, 0.0 }
 0x2a6   :  { %v1763_v36 = vpop.eup %1762  ;;  %v1352_v31 = vsel %vm1336_vm4, %v3523_v12, 0.0  ;;  %v1353_v61 = vsel %vm1337_vm7, %v3524_v10, 0.0  ;;  %vm1338_vm15 = vcmp.eq.s32.totalorder %v1987_v39, %v3530_v29  ;;  %v1155_v29 = vmin.f32 %v1154_v45, 0.0 }
 0x2a7   :  { %v1088_v48 = vmul.f32 0.6931472, %v1763_v36  ;;  %v1231_v18 = vsub.f32 0.0, %v1230_v60  ;;  %v1298_v1 = vrot.slane %v1297_v52, 2  ;;  %v1364_v15 = vadd.f32 %v1363_v30, %v1349_v26 }
 0x2a8   :  { %v1354_v20 = vsel %vm1338_vm15, %v3529_v21, 0.0  ;;  %v1229_v45 = vmin.f32 %v1228_v27, 0.0 }
 0x2a9   :  { %v1765_v51 = vpop.eup %1764  ;;  %v1094_v28 = vsel %vm1093_vm9, %v1091_v47, %v1088_v48  ;;  %v1232_v13 = vmul.f32 1.442695, %v1231_v18  ;;  %v1299_v43 = vadd.f32 %v1298_v1, %v1297_v52  ;;  %v1365_v59 = vadd.f32 %v1364_v15, %v1350_v34 }
 0x2aa   :  { %v1095_v9 = vsub.f32 %v1081_v24, %v1094_v28  ;;  %v1160_v33 = vadd.f32 1.0, %v1765_v51  ;;  %v1163_v16 = vmul.f32 -0.5, %v1765_v51  ;;  %v1166_v44 = vand.u32 2147483647, %v1765_v51 }
 0x2ab   :  { %1766 = vpow2.f32 %v1232_v13  ;;  %v1300_v25 = vrot.slane %v1299_v43, 1  ;;  %v1366_v56 = vadd.f32 %v1365_v59, %v1351_v53 }
 0x2ac   :  { %v1096_v14 = vadd.f32 %v1095_v9, %v1022_v58  ;;  %1768 = vlog2.f32 %v1160_v33  ;;  %v1164_v7 = vadd.f32 1.0, %v1163_v16  ;;  %vm1167_vm12 = vcmp.lt.f32.partialorder %v1166_v44, 0.0004427343 }
 0x2ad   :  { %v1301_v4 = vadd.f32 %v1300_v25, %v1299_v43  ;;  %v1367_v5 = vadd.f32 %v1366_v56, %v1352_v31 }
 0x2ae   :  { %v1165_v0 = vmul.f32 %v1765_v51, %v1164_v7 }
 0x2af   :  { %v1302_v3 = vsub.f32 0.0, %v1301_v4  ;;  %v1368_v40 = vadd.f32 %v1367_v5, %v1353_v61 }
 0x2b1   :  { %v1304_v11 = vand.u32 2147483647, %v1302_v3  ;;  %v1369_v58 = vadd.f32 %v1368_v40, %v1354_v20  ;;  %v1303_v53 = vmin.f32 %v1302_v3, 0.0 }
 0x2b3   :  { %v1305_v35 = vsub.f32 0.0, %v1304_v11  ;;  %v1370_v12 = vrot.slane %v1369_v58, 4 }
 0x2b5   :  { %v1767_v50 = vpop.eup %1766  ;;  %v1306_v54 = vmul.f32 1.442695, %v1305_v35  ;;  %v1371_v38 = vadd.f32 %v1370_v12, %v1369_v58 }
 0x2b6   :  { %v1769_v10 = vpop.eup %1768  ;;  %v1234_v63 = vadd.f32 1.0, %v1767_v50  ;;  %v1237_v6 = vmul.f32 -0.5, %v1767_v50  ;;  %v1240_v49 = vand.u32 2147483647, %v1767_v50 }
 0x2b7   :  { %v1162_v55 = vmul.f32 0.6931472, %v1769_v10  ;;  %1770 = vpow2.f32 %v1306_v54  ;;  %v1372_v39 = vrot.slane %v1371_v38, 2 }
 0x2b8   :  { %1772 = vlog2.f32 %v1234_v63  ;;  %v1238_v57 = vadd.f32 1.0, %v1237_v6  ;;  %vm1241_vm5 = vcmp.lt.f32.partialorder %v1240_v49, 0.0004427343 }
 0x2b9   :  { %v1168_v21 = vsel %vm1167_vm12, %v1165_v0, %v1162_v55  ;;  %v1373_v32 = vadd.f32 %v1372_v39, %v1371_v38 }
 0x2ba   :  { %v1169_v42 = vsub.f32 %v1155_v29, %v1168_v21  ;;  %v1239_v60 = vmul.f32 %v1767_v50, %v1238_v57 }
 0x2bb   :  { %v1374_v17 = vrot.slane %v1373_v32, 1 }
 0x2bc   :  { %v1170_v22 = vadd.f32 %v1169_v42, %v1096_v14 }
 0x2bd   :  { %v1375_v37 = vadd.f32 %v1374_v17, %v1373_v32 }
 0x2bf   :  { %v1376_v41 = vsub.f32 0.0, %v1375_v37 }
 0x2c1   :  { %v1771_v2 = vpop.eup %1770  ;;  %v1378_v46 = vand.u32 2147483647, %v1376_v41  ;;  %v1377_v14 = vmin.f32 %v1376_v41, 0.0 }
 0x2c2   :  { %v1773_v8 = vpop.eup %1772  ;;  %v1308_v23 = vadd.f32 1.0, %v1771_v2  ;;  %v1311_v24 = vmul.f32 -0.5, %v1771_v2  ;;  %v1314_v18 = vand.u32 2147483647, %v1771_v2 }
 0x2c3   :  { %v1236_v26 = vmul.f32 0.6931472, %v1773_v8  ;;  %v1379_v19 = vsub.f32 0.0, %v1378_v46 }
 0x2c4   :  { %1774 = vlog2.f32 %v1308_v23  ;;  %v1312_v48 = vadd.f32 1.0, %v1311_v24  ;;  %vm1315_vm14 = vcmp.lt.f32.partialorder %v1314_v18, 0.0004427343 }
 0x2c5   :  { %v1242_v52 = vsel %vm1241_vm5, %v1239_v60, %v1236_v26  ;;  %v1380_v30 = vmul.f32 1.442695, %v1379_v19 }
 0x2c6   :  { %v1243_v36 = vsub.f32 %v1229_v45, %v1242_v52  ;;  %v1313_v34 = vmul.f32 %v1771_v2, %v1312_v48 }
 0x2c7   :  { %1776 = vpow2.f32 %v1380_v30 }
 0x2c8   :  { %v1244_v47 = vadd.f32 %v1243_v36, %v1170_v22 }
 0x2ce   :  { %v1775_v1 = vpop.eup %1774 }
 0x2cf   :  { %v1310_v15 = vmul.f32 0.6931472, %v1775_v1 }
 0x2d1   :  { %v1777_v51 = vpop.eup %1776  ;;  %v1316_v28 = vsel %vm1315_vm14, %v1313_v34, %v1310_v15 }
 0x2d2   :  { %v1317_v13 = vsub.f32 %v1303_v53, %v1316_v28  ;;  %v1382_v62 = vadd.f32 1.0, %v1777_v51  ;;  %v1385_v43 = vmul.f32 -0.5, %v1777_v51  ;;  %v1388_v9 = vand.u32 2147483647, %v1777_v51 }
 0x2d4   :  { %v1318_v27 = vadd.f32 %v1317_v13, %v1244_v47  ;;  %1778 = vlog2.f32 %v1382_v62  ;;  %v1386_v59 = vadd.f32 1.0, %v1385_v43  ;;  %vm1389_vm6 = vcmp.lt.f32.partialorder %v1388_v9, 0.0004427343 }
 0x2d6   :  { %v1387_v56 = vmul.f32 %v1777_v51, %v1386_v59 }
 0x2de   :  { %v1779_v33 = vpop.eup %1778 }
 0x2df   :  { %v1384_v25 = vmul.f32 0.6931472, %v1779_v33 }
 0x2e1   :  { %v1390_v31 = vsel %vm1389_vm6, %v1387_v56, %v1384_v25 }
 0x2e2   :  { %v1391_v61 = vsub.f32 %v1377_v14, %v1390_v31 }
 0x2e4   :  { %v1392_v4 = vadd.f32 %v1391_v61, %v1318_v27 }
 0x2e6   :  { %v1393_v5 = vsub.f32 0.0, %v1392_v4 }
 0x2e8   :  { %1394 = vst [vmem:[#allocation2] sm:$0x1] %v1393_v5 }
 0x2e9   :  { %1791 = shalt.err (!%p1788_p4)
}
 0x2ea   :  { %s1792_s6 = scalar_lea.hbm %s3427_s4, 16 }
 0x2eb   :  { %p1793_p5 = scmp.ne.s32.totalorder %s3427_s4, %s1792_s6  ;;  %p1796_p6 = scmp.lt.u32.totalorder %s1792_s6, %s3427_s4 }
 0x2ed   :  { %p1798_p7 = pnand %p1796_p6, %p1793_p5 }
 0x2ef   :  { %1801 = shalt.err (!%p1798_p7)
}
 0x2f0   :  { %1404 = dma.vmem_to_hbm [thread:$0]  %s1402_s28, 16, %s3427_s4, [#allocation3]  }
 0x2f1   :  { %1802 = dma.done.wait [#allocation3], 16  }
 0x2f2   :  { %1803 = vsyncadd [#allocation3], 4294967280 }
 0x2f3   :  { %1408 = vsyncpa [#allocation3], 1 }

</bundles_post_ra>
